<compile_context>
chip_gen: v5e
topology: v5e:2x2
jax: 0.10.0
libtpu: 0.0.40
codegen_flags: <defaults>
</compile_context>

<pallas_src>
import jax
import jax.numpy as jnp
import numpy as np
from jax import lax
from jax.experimental import pallas as pl
from jax.experimental.pallas import tpu as pltpu

_UNROLL = 8  # steps per coalesced (8, lane) output store (== sublane tile height)


def _round_up(x, m):
    return ((x + m - 1) // m) * m


def _sigmoid(x):
    # single-EUP form: sigmoid(x) == 0.5*tanh(0.5*x) + 0.5 (no full-precision divide)
    return jnp.tanh(x * 0.5) * 0.5 + 0.5


def _make_leaf_integ_kernel(*, t_blk, t_hist, lane_blk, fix_var, has_up):
    noise_scale = float(fix_var) ** 0.5
    n_outer = t_blk // _UNROLL

    def kernel(*refs):
        if has_up:
            (s_ref, noise_ref, up_ref,
             w_sub_ref, th_syn_ref, th_spk_ref, w_spk_ref,
             kern_rot_ref, tap0_ref,
             y_ref, z_ref, mu_ref, down_ref,
             buf_ref) = refs
        else:
            (s_ref, noise_ref,
             w_sub_ref, th_syn_ref, th_spk_ref, w_spk_ref,
             kern_rot_ref, tap0_ref,
             y_ref, z_ref, mu_ref, down_ref,
             buf_ref) = refs
            up_ref = None

        ti = pl.program_id(1)  # serial time-block axis (lane-group axis is 0)

        # Zero the circular spike history at the start of each lane-group sweep.
        @pl.when(ti == 0)
        def _():
            buf_ref[...] = jnp.zeros_like(buf_ref)

        # ---- hoist loop-invariant Ref reads (one vld each, outside the loop) ----
        w_sub = w_sub_ref[...]
        th_syn = th_syn_ref[...]
        th_spk = th_spk_ref[...]
        w_spk = w_spk_ref[...]
        tap0 = tap0_ref[...]  # lag-1 history tap kern[:, 0] for the closing FMA
        hist_rows = jax.lax.broadcasted_iota(jnp.int32, (t_hist, lane_blk), 0)
        out_rows = jax.lax.broadcasted_iota(jnp.int32, (_UNROLL, lane_blk), 0)
        zeros_tile = jnp.zeros((_UNROLL, lane_blk), jnp.float32)

        # NOTE: int32 global time; only an issue for T_data approaching 2^31.
        g_block0 = ti * t_blk
        buf0 = buf_ref[...]                               # (t_hist, lane_blk)
        phase0 = lax.rem(g_block0, t_hist)
        # Full reduction only once per grid block; per-step filtered is carried.
        filt0 = jnp.sum(buf0 * kern_rot_ref[phase0], axis=0, keepdims=True)

        def outer(blk, carry):
            buf, filt = carry
            base = pl.multiple_of(blk * _UNROLL, _UNROLL)  # aligned store offset
            g_base = g_block0 + base
            y_tile = zeros_tile
            z_tile = zeros_tile
            mu_tile = zeros_tile
            down_tile = zeros_tile
            for step in range(_UNROLL):                    # static unroll
                t_loc = base + step
                phase = lax.rem(g_base + step, t_hist)
                phase_next = lax.rem(g_base + step + 1, t_hist)

                # --- OFF the critical path: partial filtered(t+1) over the
                # T_hist-1 buffer rows that do NOT change this step; it depends
                # only on the pre-update buffer and kern_rot[phase_next], so it
                # overlaps the sigmoid chain below.
                kern_next = kern_rot_ref[phase_next]       # (t_hist, lane_blk)
                partial = jnp.sum(
                    jnp.where(hist_rows == phase, 0.0, buf * kern_next),
                    axis=0, keepdims=True)

                # --- serial chain: filtered(t) -> sigmoid -> mu -> sigmoid -> z(t)
                x_out = _sigmoid(s_ref[pl.ds(t_loc, 1), :] + filt + th_syn)
                y_row = x_out * w_sub
                down_row = x_out * w_spk + th_spk
                if has_up:
                    # == (up*prec + down*prec) / (2*prec), simplified
                    mu_row = (up_ref[pl.ds(t_loc, 1), :] + down_row) * 0.5
                else:
                    mu_row = down_row
                z_row = _sigmoid(
                    mu_row + noise_ref[pl.ds(t_loc, 1), :] * noise_scale)

                # circular-buffer insert: pure VPU select, no cross-sublane move
                buf = jnp.where(hist_rows == phase, z_row, buf)
                # single FMA closes the recurrence for the next step
                filt = partial + z_row * tap0

                # accumulate output rows into (8, lane) register tiles
                sel = out_rows == step
                y_tile = jnp.where(sel, y_row, y_tile)
                z_tile = jnp.where(sel, z_row, z_tile)
                mu_tile = jnp.where(sel, mu_row, mu_tile)
                down_tile = jnp.where(sel, down_row, down_tile)

            # one aligned, unmasked (8, lane) store per output every 8 steps
            y_ref[pl.ds(base, _UNROLL), :] = y_tile
            z_ref[pl.ds(base, _UNROLL), :] = z_tile
            mu_ref[pl.ds(base, _UNROLL), :] = mu_tile
            down_ref[pl.ds(base, _UNROLL), :] = down_tile
            return buf, filt

        buf_final, _ = lax.fori_loop(0, n_outer, outer, (buf0, filt0))
        buf_ref[...] = buf_final                           # carry to next time block

    return kernel


def _history_kernel(params, t_hist):
    """Per-subunit history kernel kern[s, i], i=0..T_hist-1 (lag-1 tap at i=0 after flip)."""
    f32 = jnp.float32
    delta = params["delta_hist"].astype(f32)
    tau = params["tau_hist"].astype(f32)
    K = params["K_hist"].astype(f32)
    sub_no = delta.shape[0]
    hist_basis_no = int(tau.shape[0])
    t = jnp.arange(t_hist, dtype=f32)[None, :] - delta[:, None]   # (sub_no, T_hist)
    t = jnp.maximum(t, 0.0)                                       # t[t < 0] = 0
    kern = jnp.zeros((sub_no, t_hist), f32)
    for b in range(hist_basis_no):
        t_tau = t / jnp.exp(tau[b])
        kern = kern + t_tau * jnp.exp(-t_tau) * K[:, b:b + 1]
    return kern


def leaf_integ_forward(S_conv, noise, params, *, T_hist, fix_var, up_mu_Z=None,
                       t_blk_max=2048, lane_blk=128):
    """Pallas forward. Inputs (T, sub_no) or batched (B, T, sub_no).
    Returns (final_Y, final_Z, mu_Z, down_mu_Z) with the same leading shape."""
    f32 = jnp.float32
    t_hist = int(T_hist)
    has_up = up_mu_Z is not None

    squeeze_batch = (S_conv.ndim == 2)
    if squeeze_batch:
        S_conv = S_conv[None]
        noise = noise[None]
        if has_up:
            up_mu_Z = up_mu_Z[None]
    B, T_data, sub_no = S_conv.shape

    # ---- lane packing: (batch, sub_no) -> lane axis, split into 128-lane groups ----
    lanes_used = B * sub_no
    lanes_total = _round_up(max(lanes_used, 1), lane_blk)
    num_groups = lanes_total // lane_blk

    # ---- time blocking: few, large serial blocks; cap by a ~28 MiB VMEM budget
    # (safe against v7x's smaller scoped VMEM even with double-buffered tiles) ----
    n_ts_in = 3 if has_up else 2
    bytes_per_trow = 2 * (n_ts_in + 4) * lane_blk * 4      # double-buffered in+out tiles
    small_bytes = (2 * (t_hist * t_hist + 5) + t_hist) * lane_blk * 4
    t_cap = max(_UNROLL, ((28 << 20) - small_bytes) // bytes_per_trow)
    t_cap = (t_cap // _UNROLL) * _UNROLL
    t_blk_max8 = max(_UNROLL, (int(t_blk_max) // _UNROLL) * _UNROLL)
    t_blk = min(t_blk_max8, int(t_cap), _round_up(T_data, _UNROLL))
    num_blk = (T_data + t_blk - 1) // t_blk
    t_pad = num_blk * t_blk
    vmem_limit = int(min(max(t_blk * bytes_per_trow + small_bytes + (4 << 20),
                             32 << 20), 48 << 20))

    def pack_ts(x):   # (B, T, sub_no) -> (t_pad, lanes_total)
        x = jnp.transpose(x.astype(f32), (1, 0, 2)).reshape(T_data, lanes_used)
        return jnp.pad(x, ((0, t_pad - T_data), (0, lanes_total - lanes_used)))

    def pack_vec(v):  # (sub_no,) -> (1, lanes_total), tiled over batch
        v = jnp.tile(v.astype(f32), B).reshape(1, lanes_used)
        return jnp.pad(v, ((0, 0), (0, lanes_total - lanes_used)))

    # ---- history kernel table precomputed in the wrapper (not in-kernel) ----
    # kern_rot[p, m, lane] = kern[lane, T_hist-1 - ((m - p) mod T_hist)], so the
    # grouped conv1d becomes an elementwise multiply against the circular buffer
    # followed by a cross-sublane sum (and, incrementally, a single lag-1 FMA).
    kern = _history_kernel(params, t_hist)                            # (sub_no, T_hist)
    kern_lanes = jnp.pad(jnp.tile(kern, (B, 1)),
                         ((0, lanes_total - lanes_used), (0, 0)))     # (lanes_total, T_hist)
    p_idx = jnp.arange(t_hist)[:, None]
    m_idx = jnp.arange(t_hist)[None, :]
    tap_idx = (t_hist - 1) - jnp.mod(m_idx - p_idx, t_hist)           # (T_hist, T_hist)
    kern_rot = kern_lanes.T[tap_idx]                                  # (T_hist, T_hist, lanes_total)
    tap0 = jnp.pad(jnp.tile(kern[:, 0], B).reshape(1, lanes_used),
                   ((0, 0), (0, lanes_total - lanes_used)))           # lag-1 tap

    ts_spec = pl.BlockSpec((t_blk, lane_blk), lambda g, i: (i, g))
    par_spec = pl.BlockSpec((1, lane_blk), lambda g, i: (0, g))
    rot_spec = pl.BlockSpec((t_hist, t_hist, lane_blk), lambda g, i: (0, 0, g))

    args = [pack_ts(S_conv), pack_ts(noise)]
    in_specs = [ts_spec, ts_spec]
    if has_up:
        args.append(pack_ts(up_mu_Z))
        in_specs.append(ts_spec)
    args += [pack_vec(params["W_sub"]), pack_vec(params["theta_syn"]),
             pack_vec(params["theta_spike"]), pack_vec(params["W_spike"]),
             kern_rot, tap0]
    in_specs += [par_spec, par_spec, par_spec, par_spec, rot_spec, par_spec]

    kernel = _make_leaf_integ_kernel(
        t_blk=t_blk, t_hist=t_hist, lane_blk=lane_blk,
        fix_var=float(fix_var), has_up=has_up)

    out_shape = tuple(jax.ShapeDtypeStruct((t_pad, lanes_total), f32) for _ in range(4))
    out_specs = tuple(pl.BlockSpec((t_blk, lane_blk), lambda g, i: (i, g))
                      for _ in range(4))

    call = pl.pallas_call(
        kernel,
        grid=(num_groups, num_blk),
        in_specs=in_specs,
        out_specs=out_specs,
        out_shape=out_shape,
        scratch_shapes=[pltpu.VMEM((t_hist, lane_blk), f32)],  # circular Z history
        compiler_params=pltpu.CompilerParams(
            # lane-group axis parallel (v7x 2-TC sharding); time axis serial
            dimension_semantics=("parallel", "arbitrary"),
            vmem_limit_bytes=vmem_limit),
    )
    Y, Z, MU, DOWN = call(*args)

    def unpack(o):
        o = o[:T_data, :lanes_used].reshape(T_data, B, sub_no)
        o = jnp.transpose(o, (1, 0, 2))
        return o[0] if squeeze_batch else o

    return tuple(unpack(o) for o in (Y, Z, MU, DOWN))


def leaf_integ_reference(S_conv, noise, params, *, T_hist, fix_var, up_mu_Z=None):
    """Pure-JAX reference mirroring the PyTorch forward (noise passed explicitly)."""
    T_data, sub_no = S_conv.shape[-2], S_conv.shape[-1]
    hist_basis_no = int(params["tau_hist"].shape[0])
    has_up = up_mu_Z is not None
    up = up_mu_Z if has_up else jnp.zeros_like(S_conv)
    fix_prec = 1.0 / fix_var

    t = jnp.arange(T_hist, dtype=jnp.float32)[None, :] - params["delta_hist"][:, None]
    t = jnp.maximum(t, 0.0)
    kern = jnp.zeros((sub_no, T_hist), jnp.float32)
    for b in range(hist_basis_no):
        t_tau = t / jnp.exp(params["tau_hist"][b])
        kern = kern + t_tau * jnp.exp(-t_tau) * params["K_hist"][:, b:b + 1]
    kern_flip = jnp.flip(kern, axis=1)

    def step(hist, inp):
        s_t, n_t, up_t = inp
        filtered = jnp.sum(hist * kern_flip, axis=1)
        x_out = jax.nn.sigmoid(s_t + filtered + params["theta_syn"])
        y_t = x_out * params["W_sub"]
        down_t = x_out * params["W_spike"] + params["theta_spike"]
        if has_up:
            mu_t = (up_t * fix_prec + down_t * fix_prec) / (2.0 * fix_prec)
        else:
            mu_t = down_t
        z_t = jax.nn.sigmoid(mu_t + n_t * fix_var ** 0.5)
        new_hist = jnp.concatenate([hist[:, 1:], z_t[:, None]], axis=1)
        return new_hist, (y_t, z_t, mu_t, down_t)

    init = jnp.zeros((sub_no, T_hist), jnp.float32)
    _, (Y, Z, MU, DOWN) = jax.lax.scan(step, init, (S_conv, noise, up))
    return Y, Z, MU, DOWN


if __name__ == "__main__":
    sub_no = 8
    T_hist = 16
    hist_basis_no = 3
    fix_var = 0.25
    theta_spike_init = -1.0
    W_spike_init = 1.5
    T_data = 50   # not a multiple of the time block -> exercises padding + grid

    key = jax.random.PRNGKey(0)
    k_khist, k_delta, k_sconv, k_noise, k_up = jax.random.split(key, 5)

    params = {
        "W_sub": jnp.full((sub_no,), 0.25, jnp.float32),
        "theta_syn": jnp.zeros((sub_no,), jnp.float32),
        "theta_spike": jnp.full((sub_no,), theta_spike_init, jnp.float32),
        "W_spike": jnp.full((sub_no,), W_spike_init, jnp.float32),
        "tau_hist": jnp.arange(0.5, 0.5 + hist_basis_no * 0.5, 0.5, dtype=jnp.float32),
        # __init__ uses zeros for K_hist / delta_hist; small nonzero values are
        # used so the history-convolution path is actually exercised.
        "K_hist": 0.1 * jax.random.normal(k_khist, (sub_no, hist_basis_no), jnp.float32),
        "delta_hist": 0.5 * jax.random.uniform(k_delta, (sub_no,), jnp.float32),
    }

    S_conv = jax.random.normal(k_sconv, (T_data, sub_no), jnp.float32)
    # TODO(synk): the per-step torch.randn is replaced by a deterministic
    # precomputed noise tensor (same distribution, passed as a kernel input).
    noise = jax.random.normal(k_noise, (T_data, sub_no), jnp.float32)
    up_mu_Z = 0.3 * jax.random.normal(k_up, (T_data, sub_no), jnp.float32)

    # (1) single sequence, no up path; small t_blk_max exercises the multi-block
    # time grid and the cross-block spike-history / filtered carry.
    outs = leaf_integ_forward(S_conv, noise, params, T_hist=T_hist,
                              fix_var=fix_var, t_blk_max=24)
    outs = jax.block_until_ready(outs)
    refs = leaf_integ_reference(S_conv, noise, params, T_hist=T_hist, fix_var=fix_var)
    for o, r in zip(outs, refs):
        assert o.shape == (T_data, sub_no)
        np.testing.assert_allclose(np.asarray(o), np.asarray(r), atol=1e-4, rtol=1e-4)

    # (2) single sequence with the up_mu_Z blend
    outs_up = leaf_integ_forward(S_conv, noise, params, T_hist=T_hist,
                                 fix_var=fix_var, up_mu_Z=up_mu_Z, t_blk_max=24)
    outs_up = jax.block_until_ready(outs_up)
    refs_up = leaf_integ_reference(S_conv, noise, params, T_hist=T_hist,
                                   fix_var=fix_var, up_mu_Z=up_mu_Z)
    for o, r in zip(outs_up, refs_up):
        assert o.shape == (T_data, sub_no)
        np.testing.assert_allclose(np.asarray(o), np.asarray(r), atol=1e-4, rtol=1e-4)

    # (3) batched sequences packed into the lane axis (lane utilization) plus the
    # "parallel" lane-group grid axis (lets v7x's second TensorCore take work).
    B = 20   # 20*8 = 160 lanes -> 2 lane groups of 128
    kb_s, kb_n, kb_u = jax.random.split(jax.random.PRNGKey(1), 3)
    Sb = jax.random.normal(kb_s, (B, T_data, sub_no), jnp.float32)
    Nb = jax.random.normal(kb_n, (B, T_data, sub_no), jnp.float32)
    Ub = 0.3 * jax.random.normal(kb_u, (B, T_data, sub_no), jnp.float32)
    outs_b = leaf_integ_forward(Sb, Nb, params, T_hist=T_hist,
                                fix_var=fix_var, up_mu_Z=Ub, t_blk_max=24)
    outs_b = jax.block_until_ready(outs_b)
    refs_b = jax.vmap(lambda s, n, u: leaf_integ_reference(
        s, n, params, T_hist=T_hist, fix_var=fix_var, up_mu_Z=u))(Sb, Nb, Ub)
    for o, r in zip(outs_b, refs_b):
        assert o.shape == (B, T_data, sub_no)
        np.testing.assert_allclose(np.asarray(o), np.asarray(r), atol=1e-4, rtol=1e-4)

    print("KERNEL_OK")
</pallas_src>

<mosaic_0001>
module attributes {stable_mosaic.version = 11 : i64} {
  func.func @kernel(%arg0: i32, %arg1: i32, %arg2: memref<24x128xf32, #tpu.memory_space<vmem>>, %arg3: memref<24x128xf32, #tpu.memory_space<vmem>>, %arg4: memref<1x128xf32, #tpu.memory_space<vmem>>, %arg5: memref<1x128xf32, #tpu.memory_space<vmem>>, %arg6: memref<1x128xf32, #tpu.memory_space<vmem>>, %arg7: memref<1x128xf32, #tpu.memory_space<vmem>>, %arg8: memref<16x16x128xf32, #tpu.memory_space<vmem>>, %arg9: memref<1x128xf32, #tpu.memory_space<vmem>>, %arg10: memref<24x128xf32, #tpu.memory_space<vmem>>, %arg11: memref<24x128xf32, #tpu.memory_space<vmem>>, %arg12: memref<24x128xf32, #tpu.memory_space<vmem>>, %arg13: memref<24x128xf32, #tpu.memory_space<vmem>>, %arg14: memref<16x128xf32, #tpu.memory_space<vmem>>) attributes {dimension_semantics = [#tpu.dimension_semantics<parallel>, #tpu.dimension_semantics<arbitrary>], iteration_bounds = array<i64: 1, 3>, scalar_prefetch = 0 : i64, scratch_operands = 1 : i64, tpu.core_type = #tpu.core_type<tc>, window_params = [{transform_indices = @transform_0, window_bounds = array<i64: 24, 128>}, {transform_indices = @transform_1, window_bounds = array<i64: 24, 128>}, {transform_indices = @transform_2, window_bounds = array<i64: 1, 128>}, {transform_indices = @transform_3, window_bounds = array<i64: 1, 128>}, {transform_indices = @transform_4, window_bounds = array<i64: 1, 128>}, {transform_indices = @transform_5, window_bounds = array<i64: 1, 128>}, {transform_indices = @transform_6, window_bounds = array<i64: 16, 16, 128>}, {transform_indices = @transform_7, window_bounds = array<i64: 1, 128>}, {transform_indices = @transform_8, window_bounds = array<i64: 24, 128>}, {transform_indices = @transform_9, window_bounds = array<i64: 24, 128>}, {transform_indices = @transform_10, window_bounds = array<i64: 24, 128>}, {transform_indices = @transform_11, window_bounds = array<i64: 24, 128>}]} {
    %c0_i32 = arith.constant 0 : i32
    %0 = arith.cmpi eq, %arg1, %c0_i32 : i32
    %1 = arith.extui %0 : i1 to i32
    %c0_i32_0 = arith.constant 0 : i32
    %2 = arith.cmpi ne, %1, %c0_i32_0 : i32
    scf.if %2 {
      %cst_19 = arith.constant 0.000000e+00 : f32
      %23 = vector.broadcast %cst_19 : f32 to vector<16x128xf32>
      %c0_20 = arith.constant 0 : index
      %c0_21 = arith.constant 0 : index
      %24 = vector.load %arg14[%c0_20, %c0_21] : memref<16x128xf32, #tpu.memory_space<vmem>>, vector<16x128xf32>
      tpu.vector_store %arg14[%c0_20, %c0_21], %23 {strides = array<i32>} : memref<16x128xf32, #tpu.memory_space<vmem>>, vector<16x128xf32>,
    } else {
    }
    %c0 = arith.constant 0 : index
    %c0_1 = arith.constant 0 : index
    %3 = vector.load %arg4[%c0, %c0_1] : memref<1x128xf32, #tpu.memory_space<vmem>>, vector<1x128xf32>
    %c0_2 = arith.constant 0 : index
    %c0_3 = arith.constant 0 : index
    %4 = vector.load %arg5[%c0_2, %c0_3] : memref<1x128xf32, #tpu.memory_space<vmem>>, vector<1x128xf32>
    %c0_4 = arith.constant 0 : index
    %c0_5 = arith.constant 0 : index
    %5 = vector.load %arg6[%c0_4, %c0_5] : memref<1x128xf32, #tpu.memory_space<vmem>>, vector<1x128xf32>
    %c0_6 = arith.constant 0 : index
    %c0_7 = arith.constant 0 : index
    %6 = vector.load %arg7[%c0_6, %c0_7] : memref<1x128xf32, #tpu.memory_space<vmem>>, vector<1x128xf32>
    %c0_8 = arith.constant 0 : index
    %c0_9 = arith.constant 0 : index
    %7 = vector.load %arg9[%c0_8, %c0_9] : memref<1x128xf32, #tpu.memory_space<vmem>>, vector<1x128xf32>
    %8 = tpu.iota {dimensions = array<i32: 0>} : vector<16x128xi32>
    %9 = tpu.iota {dimensions = array<i32: 0>} : vector<8x128xi32>
    %cst = arith.constant 0.000000e+00 : f32
    %10 = vector.broadcast %cst : f32 to vector<8x128xf32>
    %c24_i32 = arith.constant 24 : i32
    %11 = arith.muli %arg1, %c24_i32 : i32
    %c0_10 = arith.constant 0 : index
    %c0_11 = arith.constant 0 : index
    %12 = vector.load %arg14[%c0_10, %c0_11] : memref<16x128xf32, #tpu.memory_space<vmem>>, vector<16x128xf32>
    %c16_i32 = arith.constant 16 : i32
    %13 = arith.remsi %11, %c16_i32 : i32
    %14 = arith.index_cast %13 : i32 to index
    %c0_12 = arith.constant 0 : index
    %c0_13 = arith.constant 0 : index
    %15 = vector.load %arg8[%14, %c0_12, %c0_13] : memref<16x16x128xf32, #tpu.memory_space<vmem>>, vector<1x16x128xf32>
    %16 = vector.shape_cast %15 : vector<1x16x128xf32> to vector<16x128xf32>
    %17 = arith.mulf %12, %16 : vector<16x128xf32>
    %cst_14 = arith.constant dense<0.000000e+00> : vector<128xf32>
    %18 = vector.multi_reduction <add>, %17, %cst_14 [0] : vector<16x128xf32> to vector<128xf32>
    %19 = vector.shape_cast %18 : vector<128xf32> to vector<1x128xf32>
    %c0_i32_15 = arith.constant 0 : i32
    %c3_i32 = arith.constant 3 : i32
    %20 = arith.addi %c0_i32_15, %c3_i32 : i32
    %c1_i32 = arith.constant 1 : i32
    %21:2 = scf.for %arg15 = %c0_i32_15 to %20 step %c1_i32 iter_args(%arg16 = %12, %arg17 = %19) -> (vector<16x128xf32>, vector<1x128xf32>)  : i32 {
      %c8_i32 = arith.constant 8 : i32
      %23 = arith.muli %arg15, %c8_i32 : i32
      %24 = tpu.assume_multiple %23, 8 : i32
      %25 = arith.addi %11, %24 : i32
      %c0_i32_19 = arith.constant 0 : i32
      %26 = arith.addi %24, %c0_i32_19 : i32
      %c0_i32_20 = arith.constant 0 : i32
      %27 = arith.addi %25, %c0_i32_20 : i32
      %c16_i32_21 = arith.constant 16 : i32
      %28 = arith.remsi %27, %c16_i32_21 : i32
      %c0_i32_22 = arith.constant 0 : i32
      %29 = arith.addi %25, %c0_i32_22 : i32
      %c1_i32_23 = arith.constant 1 : i32
      %30 = arith.addi %29, %c1_i32_23 : i32
      %c16_i32_24 = arith.constant 16 : i32
      %31 = arith.remsi %30, %c16_i32_24 : i32
      %32 = arith.index_cast %31 : i32 to index
      %c0_25 = arith.constant 0 : index
      %c0_26 = arith.constant 0 : index
      %33 = vector.load %arg8[%32, %c0_25, %c0_26] : memref<16x16x128xf32, #tpu.memory_space<vmem>>, vector<1x16x128xf32>
      %34 = vector.shape_cast %33 : vector<1x16x128xf32> to vector<16x128xf32>
      %35 = vector.broadcast %28 : i32 to vector<16x128xi32>
      %36 = arith.cmpi eq, %8, %35 : vector<16x128xi32>
      %37 = arith.mulf %arg16, %34 : vector<16x128xf32>
      %cst_27 = arith.constant 0.000000e+00 : f32
      %38 = vector.broadcast %cst_27 : f32 to vector<16x128xf32>
      %39 = arith.select %36, %38, %37 : vector<16x128xi1>, vector<16x128xf32>
      %cst_28 = arith.constant dense<0.000000e+00> : vector<128xf32>
      %40 = vector.multi_reduction <add>, %39, %cst_28 [0] : vector<16x128xf32> to vector<128xf32>
      %41 = vector.shape_cast %40 : vector<128xf32> to vector<1x128xf32>
      %42 = arith.index_cast %26 : i32 to index
      %c0_29 = arith.constant 0 : index
      %43 = vector.load %arg2[%42, %c0_29] : memref<24x128xf32, #tpu.memory_space<vmem>>, vector<1x128xf32>
      %44 = arith.addf %43, %arg17 : vector<1x128xf32>
      %45 = arith.addf %44, %4 : vector<1x128xf32>
      %cst_30 = arith.constant 5.000000e-01 : f32
      %46 = vector.broadcast %cst_30 : f32 to vector<1x128xf32>
      %47 = arith.mulf %45, %46 : vector<1x128xf32>
      %48 = math.tanh %47 : vector<1x128xf32>
      %cst_31 = arith.constant 5.000000e-01 : f32
      %49 = vector.broadcast %cst_31 : f32 to vector<1x128xf32>
      %50 = arith.mulf %48, %49 : vector<1x128xf32>
      %cst_32 = arith.constant 5.000000e-01 : f32
      %51 = vector.broadcast %cst_32 : f32 to vector<1x128xf32>
      %52 = arith.addf %50, %51 : vector<1x128xf32>
      %53 = arith.mulf %52, %3 : vector<1x128xf32>
      %54 = arith.mulf %52, %6 : vector<1x128xf32>
      %55 = arith.addf %54, %5 : vector<1x128xf32>
      %56 = arith.index_cast %26 : i32 to index
      %c0_33 = arith.constant 0 : index
      %57 = vector.load %arg3[%56, %c0_33] : memref<24x128xf32, #tpu.memory_space<vmem>>, vector<1x128xf32>
      %cst_34 = arith.constant 5.000000e-01 : f32
      %58 = vector.broadcast %cst_34 : f32 to vector<1x128xf32>
      %59 = arith.mulf %57, %58 : vector<1x128xf32>
      %60 = arith.addf %55, %59 : vector<1x128xf32>
      %cst_35 = arith.constant 5.000000e-01 : f32
      %61 = vector.broadcast %cst_35 : f32 to vector<1x128xf32>
      %62 = arith.mulf %60, %61 : vector<1x128xf32>
      %63 = math.tanh %62 : vector<1x128xf32>
      %cst_36 = arith.constant 5.000000e-01 : f32
      %64 = vector.broadcast %cst_36 : f32 to vector<1x128xf32>
      %65 = arith.mulf %63, %64 : vector<1x128xf32>
      %cst_37 = arith.constant 5.000000e-01 : f32
      %66 = vector.broadcast %cst_37 : f32 to vector<1x128xf32>
      %67 = arith.addf %65, %66 : vector<1x128xf32>
      %68 = vector.broadcast %28 : i32 to vector<16x128xi32>
      %69 = arith.cmpi eq, %8, %68 : vector<16x128xi32>
      %70 = vector.shape_cast %67 : vector<1x128xf32> to vector<1x128xf32>
      %71 = vector.broadcast %70 : vector<1x128xf32> to vector<16x128xf32>
      %72 = arith.select %69, %71, %arg16 : vector<16x128xi1>, vector<16x128xf32>
      %73 = arith.mulf %67, %7 : vector<1x128xf32>
      %74 = arith.addf %41, %73 : vector<1x128xf32>
      %c0_i32_38 = arith.constant 0 : i32
      %75 = vector.broadcast %c0_i32_38 : i32 to vector<8x128xi32>
      %76 = arith.cmpi eq, %9, %75 : vector<8x128xi32>
      %77 = vector.shape_cast %53 : vector<1x128xf32> to vector<1x128xf32>
      %78 = vector.broadcast %77 : vector<1x128xf32> to vector<8x128xf32>
      %79 = arith.select %76, %78, %10 : vector<8x128xi1>, vector<8x128xf32>
      %80 = vector.shape_cast %67 : vector<1x128xf32> to vector<1x128xf32>
      %81 = vector.broadcast %80 : vector<1x128xf32> to vector<8x128xf32>
      %82 = arith.select %76, %81, %10 : vector<8x128xi1>, vector<8x128xf32>
      %83 = vector.shape_cast %55 : vector<1x128xf32> to vector<1x128xf32>
      %84 = vector.broadcast %83 : vector<1x128xf32> to vector<8x128xf32>
      %85 = arith.select %76, %84, %10 : vector<8x128xi1>, vector<8x128xf32>
      %86 = vector.shape_cast %55 : vector<1x128xf32> to vector<1x128xf32>
      %87 = vector.broadcast %86 : vector<1x128xf32> to vector<8x128xf32>
      %88 = arith.select %76, %87, %10 : vector<8x128xi1>, vector<8x128xf32>
      %c1_i32_39 = arith.constant 1 : i32
      %89 = arith.addi %24, %c1_i32_39 : i32
      %c1_i32_40 = arith.constant 1 : i32
      %90 = arith.addi %25, %c1_i32_40 : i32
      %c16_i32_41 = arith.constant 16 : i32
      %91 = arith.remsi %90, %c16_i32_41 : i32
      %c1_i32_42 = arith.constant 1 : i32
      %92 = arith.addi %25, %c1_i32_42 : i32
      %c1_i32_43 = arith.constant 1 : i32
      %93 = arith.addi %92, %c1_i32_43 : i32
      %c16_i32_44 = arith.constant 16 : i32
      %94 = arith.remsi %93, %c16_i32_44 : i32
      %95 = arith.index_cast %94 : i32 to index
      %c0_45 = arith.constant 0 : index
      %c0_46 = arith.constant 0 : index
      %96 = vector.load %arg8[%95, %c0_45, %c0_46] : memref<16x16x128xf32, #tpu.memory_space<vmem>>, vector<1x16x128xf32>
      %97 = vector.shape_cast %96 : vector<1x16x128xf32> to vector<16x128xf32>
      %98 = vector.broadcast %91 : i32 to vector<16x128xi32>
      %99 = arith.cmpi eq, %8, %98 : vector<16x128xi32>
      %100 = arith.mulf %72, %97 : vector<16x128xf32>
      %cst_47 = arith.constant 0.000000e+00 : f32
      %101 = vector.broadcast %cst_47 : f32 to vector<16x128xf32>
      %102 = arith.select %99, %101, %100 : vector<16x128xi1>, vector<16x128xf32>
      %cst_48 = arith.constant dense<0.000000e+00> : vector<128xf32>
      %103 = vector.multi_reduction <add>, %102, %cst_48 [0] : vector<16x128xf32> to vector<128xf32>
      %104 = vector.shape_cast %103 : vector<128xf32> to vector<1x128xf32>
      %105 = arith.index_cast %89 : i32 to index
      %c0_49 = arith.constant 0 : index
      %106 = vector.load %arg2[%105, %c0_49] : memref<24x128xf32, #tpu.memory_space<vmem>>, vector<1x128xf32>
      %107 = arith.addf %106, %74 : vector<1x128xf32>
      %108 = arith.addf %107, %4 : vector<1x128xf32>
      %cst_50 = arith.constant 5.000000e-01 : f32
      %109 = vector.broadcast %cst_50 : f32 to vector<1x128xf32>
      %110 = arith.mulf %108, %109 : vector<1x128xf32>
      %111 = math.tanh %110 : vector<1x128xf32>
      %cst_51 = arith.constant 5.000000e-01 : f32
      %112 = vector.broadcast %cst_51 : f32 to vector<1x128xf32>
      %113 = arith.mulf %111, %112 : vector<1x128xf32>
      %cst_52 = arith.constant 5.000000e-01 : f32
      %114 = vector.broadcast %cst_52 : f32 to vector<1x128xf32>
      %115 = arith.addf %113, %114 : vector<1x128xf32>
      %116 = arith.mulf %115, %3 : vector<1x128xf32>
      %117 = arith.mulf %115, %6 : vector<1x128xf32>
      %118 = arith.addf %117, %5 : vector<1x128xf32>
      %119 = arith.index_cast %89 : i32 to index
      %c0_53 = arith.constant 0 : index
      %120 = vector.load %arg3[%119, %c0_53] : memref<24x128xf32, #tpu.memory_space<vmem>>, vector<1x128xf32>
      %cst_54 = arith.constant 5.000000e-01 : f32
      %121 = vector.broadcast %cst_54 : f32 to vector<1x128xf32>
      %122 = arith.mulf %120, %121 : vector<1x128xf32>
      %123 = arith.addf %118, %122 : vector<1x128xf32>
      %cst_55 = arith.constant 5.000000e-01 : f32
      %124 = vector.broadcast %cst_55 : f32 to vector<1x128xf32>
      %125 = arith.mulf %123, %124 : vector<1x128xf32>
      %126 = math.tanh %125 : vector<1x128xf32>
      %cst_56 = arith.constant 5.000000e-01 : f32
      %127 = vector.broadcast %cst_56 : f32 to vector<1x128xf32>
      %128 = arith.mulf %126, %127 : vector<1x128xf32>
      %cst_57 = arith.constant 5.000000e-01 : f32
      %129 = vector.broadcast %cst_57 : f32 to vector<1x128xf32>
      %130 = arith.addf %128, %129 : vector<1x128xf32>
      %131 = vector.broadcast %91 : i32 to vector<16x128xi32>
      %132 = arith.cmpi eq, %8, %131 : vector<16x128xi32>
      %133 = vector.shape_cast %130 : vector<1x128xf32> to vector<1x128xf32>
      %134 = vector.broadcast %133 : vector<1x128xf32> to vector<16x128xf32>
      %135 = arith.select %132, %134, %72 : vector<16x128xi1>, vector<16x128xf32>
      %136 = arith.mulf %130, %7 : vector<1x128xf32>
      %137 = arith.addf %104, %136 : vector<1x128xf32>
      %c1_i32_58 = arith.constant 1 : i32
      %138 = vector.broadcast %c1_i32_58 : i32 to vector<8x128xi32>
      %139 = arith.cmpi eq, %9, %138 : vector<8x128xi32>
      %140 = vector.shape_cast %116 : vector<1x128xf32> to vector<1x128xf32>
      %141 = vector.broadcast %140 : vector<1x128xf32> to vector<8x128xf32>
      %142 = arith.select %139, %141, %79 : vector<8x128xi1>, vector<8x128xf32>
      %143 = vector.shape_cast %130 : vector<1x128xf32> to vector<1x128xf32>
      %144 = vector.broadcast %143 : vector<1x128xf32> to vector<8x128xf32>
      %145 = arith.select %139, %144, %82 : vector<8x128xi1>, vector<8x128xf32>
      %146 = vector.shape_cast %118 : vector<1x128xf32> to vector<1x128xf32>
      %147 = vector.broadcast %146 : vector<1x128xf32> to vector<8x128xf32>
      %148 = arith.select %139, %147, %85 : vector<8x128xi1>, vector<8x128xf32>
      %149 = vector.shape_cast %118 : vector<1x128xf32> to vector<1x128xf32>
      %150 = vector.broadcast %149 : vector<1x128xf32> to vector<8x128xf32>
      %151 = arith.select %139, %150, %88 : vector<8x128xi1>, vector<8x128xf32>
      %c2_i32 = arith.constant 2 : i32
      %152 = arith.addi %24, %c2_i32 : i32
      %c2_i32_59 = arith.constant 2 : i32
      %153 = arith.addi %25, %c2_i32_59 : i32
      %c16_i32_60 = arith.constant 16 : i32
      %154 = arith.remsi %153, %c16_i32_60 : i32
      %c2_i32_61 = arith.constant 2 : i32
      %155 = arith.addi %25, %c2_i32_61 : i32
      %c1_i32_62 = arith.constant 1 : i32
      %156 = arith.addi %155, %c1_i32_62 : i32
      %c16_i32_63 = arith.constant 16 : i32
      %157 = arith.remsi %156, %c16_i32_63 : i32
      %158 = arith.index_cast %157 : i32 to index
      %c0_64 = arith.constant 0 : index
      %c0_65 = arith.constant 0 : index
      %159 = vector.load %arg8[%158, %c0_64, %c0_65] : memref<16x16x128xf32, #tpu.memory_space<vmem>>, vector<1x16x128xf32>
      %160 = vector.shape_cast %159 : vector<1x16x128xf32> to vector<16x128xf32>
      %161 = vector.broadcast %154 : i32 to vector<16x128xi32>
      %162 = arith.cmpi eq, %8, %161 : vector<16x128xi32>
      %163 = arith.mulf %135, %160 : vector<16x128xf32>
      %cst_66 = arith.constant 0.000000e+00 : f32
      %164 = vector.broadcast %cst_66 : f32 to vector<16x128xf32>
      %165 = arith.select %162, %164, %163 : vector<16x128xi1>, vector<16x128xf32>
      %cst_67 = arith.constant dense<0.000000e+00> : vector<128xf32>
      %166 = vector.multi_reduction <add>, %165, %cst_67 [0] : vector<16x128xf32> to vector<128xf32>
      %167 = vector.shape_cast %166 : vector<128xf32> to vector<1x128xf32>
      %168 = arith.index_cast %152 : i32 to index
      %c0_68 = arith.constant 0 : index
      %169 = vector.load %arg2[%168, %c0_68] : memref<24x128xf32, #tpu.memory_space<vmem>>, vector<1x128xf32>
      %170 = arith.addf %169, %137 : vector<1x128xf32>
      %171 = arith.addf %170, %4 : vector<1x128xf32>
      %cst_69 = arith.constant 5.000000e-01 : f32
      %172 = vector.broadcast %cst_69 : f32 to vector<1x128xf32>
      %173 = arith.mulf %171, %172 : vector<1x128xf32>
      %174 = math.tanh %173 : vector<1x128xf32>
      %cst_70 = arith.constant 5.000000e-01 : f32
      %175 = vector.broadcast %cst_70 : f32 to vector<1x128xf32>
      %176 = arith.mulf %174, %175 : vector<1x128xf32>
      %cst_71 = arith.constant 5.000000e-01 : f32
      %177 = vector.broadcast %cst_71 : f32 to vector<1x128xf32>
      %178 = arith.addf %176, %177 : vector<1x128xf32>
      %179 = arith.mulf %178, %3 : vector<1x128xf32>
      %180 = arith.mulf %178, %6 : vector<1x128xf32>
      %181 = arith.addf %180, %5 : vector<1x128xf32>
      %182 = arith.index_cast %152 : i32 to index
      %c0_72 = arith.constant 0 : index
      %183 = vector.load %arg3[%182, %c0_72] : memref<24x128xf32, #tpu.memory_space<vmem>>, vector<1x128xf32>
      %cst_73 = arith.constant 5.000000e-01 : f32
      %184 = vector.broadcast %cst_73 : f32 to vector<1x128xf32>
      %185 = arith.mulf %183, %184 : vector<1x128xf32>
      %186 = arith.addf %181, %185 : vector<1x128xf32>
      %cst_74 = arith.constant 5.000000e-01 : f32
      %187 = vector.broadcast %cst_74 : f32 to vector<1x128xf32>
      %188 = arith.mulf %186, %187 : vector<1x128xf32>
      %189 = math.tanh %188 : vector<1x128xf32>
      %cst_75 = arith.constant 5.000000e-01 : f32
      %190 = vector.broadcast %cst_75 : f32 to vector<1x128xf32>
      %191 = arith.mulf %189, %190 : vector<1x128xf32>
      %cst_76 = arith.constant 5.000000e-01 : f32
      %192 = vector.broadcast %cst_76 : f32 to vector<1x128xf32>
      %193 = arith.addf %191, %192 : vector<1x128xf32>
      %194 = vector.broadcast %154 : i32 to vector<16x128xi32>
      %195 = arith.cmpi eq, %8, %194 : vector<16x128xi32>
      %196 = vector.shape_cast %193 : vector<1x128xf32> to vector<1x128xf32>
      %197 = vector.broadcast %196 : vector<1x128xf32> to vector<16x128xf32>
      %198 = arith.select %195, %197, %135 : vector<16x128xi1>, vector<16x128xf32>
      %199 = arith.mulf %193, %7 : vector<1x128xf32>
      %200 = arith.addf %167, %199 : vector<1x128xf32>
      %c2_i32_77 = arith.constant 2 : i32
      %201 = vector.broadcast %c2_i32_77 : i32 to vector<8x128xi32>
      %202 = arith.cmpi eq, %9, %201 : vector<8x128xi32>
      %203 = vector.shape_cast %179 : vector<1x128xf32> to vector<1x128xf32>
      %204 = vector.broadcast %203 : vector<1x128xf32> to vector<8x128xf32>
      %205 = arith.select %202, %204, %142 : vector<8x128xi1>, vector<8x128xf32>
      %206 = vector.shape_cast %193 : vector<1x128xf32> to vector<1x128xf32>
      %207 = vector.broadcast %206 : vector<1x128xf32> to vector<8x128xf32>
      %208 = arith.select %202, %207, %145 : vector<8x128xi1>, vector<8x128xf32>
      %209 = vector.shape_cast %181 : vector<1x128xf32> to vector<1x128xf32>
      %210 = vector.broadcast %209 : vector<1x128xf32> to vector<8x128xf32>
      %211 = arith.select %202, %210, %148 : vector<8x128xi1>, vector<8x128xf32>
      %212 = vector.shape_cast %181 : vector<1x128xf32> to vector<1x128xf32>
      %213 = vector.broadcast %212 : vector<1x128xf32> to vector<8x128xf32>
      %214 = arith.select %202, %213, %151 : vector<8x128xi1>, vector<8x128xf32>
      %c3_i32_78 = arith.constant 3 : i32
      %215 = arith.addi %24, %c3_i32_78 : i32
      %c3_i32_79 = arith.constant 3 : i32
      %216 = arith.addi %25, %c3_i32_79 : i32
      %c16_i32_80 = arith.constant 16 : i32
      %217 = arith.remsi %216, %c16_i32_80 : i32
      %c3_i32_81 = arith.constant 3 : i32
      %218 = arith.addi %25, %c3_i32_81 : i32
      %c1_i32_82 = arith.constant 1 : i32
      %219 = arith.addi %218, %c1_i32_82 : i32
      %c16_i32_83 = arith.constant 16 : i32
      %220 = arith.remsi %219, %c16_i32_83 : i32
      %221 = arith.index_cast %220 : i32 to index
      %c0_84 = arith.constant 0 : index
      %c0_85 = arith.constant 0 : index
      %222 = vector.load %arg8[%221, %c0_84, %c0_85] : memref<16x16x128xf32, #tpu.memory_space<vmem>>, vector<1x16x128xf32>
      %223 = vector.shape_cast %222 : vector<1x16x128xf32> to vector<16x128xf32>
      %224 = vector.broadcast %217 : i32 to vector<16x128xi32>
      %225 = arith.cmpi eq, %8, %224 : vector<16x128xi32>
      %226 = arith.mulf %198, %223 : vector<16x128xf32>
      %cst_86 = arith.constant 0.000000e+00 : f32
      %227 = vector.broadcast %cst_86 : f32 to vector<16x128xf32>
      %228 = arith.select %225, %227, %226 : vector<16x128xi1>, vector<16x128xf32>
      %cst_87 = arith.constant dense<0.000000e+00> : vector<128xf32>
      %229 = vector.multi_reduction <add>, %228, %cst_87 [0] : vector<16x128xf32> to vector<128xf32>
      %230 = vector.shape_cast %229 : vector<128xf32> to vector<1x128xf32>
      %231 = arith.index_cast %215 : i32 to index
      %c0_88 = arith.constant 0 : index
      %232 = vector.load %arg2[%231, %c0_88] : memref<24x128xf32, #tpu.memory_space<vmem>>, vector<1x128xf32>
      %233 = arith.addf %232, %200 : vector<1x128xf32>
      %234 = arith.addf %233, %4 : vector<1x128xf32>
      %cst_89 = arith.constant 5.000000e-01 : f32
      %235 = vector.broadcast %cst_89 : f32 to vector<1x128xf32>
      %236 = arith.mulf %234, %235 : vector<1x128xf32>
      %237 = math.tanh %236 : vector<1x128xf32>
      %cst_90 = arith.constant 5.000000e-01 : f32
      %238 = vector.broadcast %cst_90 : f32 to vector<1x128xf32>
      %239 = arith.mulf %237, %238 : vector<1x128xf32>
      %cst_91 = arith.constant 5.000000e-01 : f32
      %240 = vector.broadcast %cst_91 : f32 to vector<1x128xf32>
      %241 = arith.addf %239, %240 : vector<1x128xf32>
      %242 = arith.mulf %241, %3 : vector<1x128xf32>
      %243 = arith.mulf %241, %6 : vector<1x128xf32>
      %244 = arith.addf %243, %5 : vector<1x128xf32>
      %245 = arith.index_cast %215 : i32 to index
      %c0_92 = arith.constant 0 : index
      %246 = vector.load %arg3[%245, %c0_92] : memref<24x128xf32, #tpu.memory_space<vmem>>, vector<1x128xf32>
      %cst_93 = arith.constant 5.000000e-01 : f32
      %247 = vector.broadcast %cst_93 : f32 to vector<1x128xf32>
      %248 = arith.mulf %246, %247 : vector<1x128xf32>
      %249 = arith.addf %244, %248 : vector<1x128xf32>
      %cst_94 = arith.constant 5.000000e-01 : f32
      %250 = vector.broadcast %cst_94 : f32 to vector<1x128xf32>
      %251 = arith.mulf %249, %250 : vector<1x128xf32>
      %252 = math.tanh %251 : vector<1x128xf32>
      %cst_95 = arith.constant 5.000000e-01 : f32
      %253 = vector.broadcast %cst_95 : f32 to vector<1x128xf32>
      %254 = arith.mulf %252, %253 : vector<1x128xf32>
      %cst_96 = arith.constant 5.000000e-01 : f32
      %255 = vector.broadcast %cst_96 : f32 to vector<1x128xf32>
      %256 = arith.addf %254, %255 : vector<1x128xf32>
      %257 = vector.broadcast %217 : i32 to vector<16x128xi32>
      %258 = arith.cmpi eq, %8, %257 : vector<16x128xi32>
      %259 = vector.shape_cast %256 : vector<1x128xf32> to vector<1x128xf32>
      %260 = vector.broadcast %259 : vector<1x128xf32> to vector<16x128xf32>
      %261 = arith.select %258, %260, %198 : vector<16x128xi1>, vector<16x128xf32>
      %262 = arith.mulf %256, %7 : vector<1x128xf32>
      %263 = arith.addf %230, %262 : vector<1x128xf32>
      %c3_i32_97 = arith.constant 3 : i32
      %264 = vector.broadcast %c3_i32_97 : i32 to vector<8x128xi32>
      %265 = arith.cmpi eq, %9, %264 : vector<8x128xi32>
      %266 = vector.shape_cast %242 : vector<1x128xf32> to vector<1x128xf32>
      %267 = vector.broadcast %266 : vector<1x128xf32> to vector<8x128xf32>
      %268 = arith.select %265, %267, %205 : vector<8x128xi1>, vector<8x128xf32>
      %269 = vector.shape_cast %256 : vector<1x128xf32> to vector<1x128xf32>
      %270 = vector.broadcast %269 : vector<1x128xf32> to vector<8x128xf32>
      %271 = arith.select %265, %270, %208 : vector<8x128xi1>, vector<8x128xf32>
      %272 = vector.shape_cast %244 : vector<1x128xf32> to vector<1x128xf32>
      %273 = vector.broadcast %272 : vector<1x128xf32> to vector<8x128xf32>
      %274 = arith.select %265, %273, %211 : vector<8x128xi1>, vector<8x128xf32>
      %275 = vector.shape_cast %244 : vector<1x128xf32> to vector<1x128xf32>
      %276 = vector.broadcast %275 : vector<1x128xf32> to vector<8x128xf32>
      %277 = arith.select %265, %276, %214 : vector<8x128xi1>, vector<8x128xf32>
      %c4_i32 = arith.constant 4 : i32
      %278 = arith.addi %24, %c4_i32 : i32
      %c4_i32_98 = arith.constant 4 : i32
      %279 = arith.addi %25, %c4_i32_98 : i32
      %c16_i32_99 = arith.constant 16 : i32
      %280 = arith.remsi %279, %c16_i32_99 : i32
      %c4_i32_100 = arith.constant 4 : i32
      %281 = arith.addi %25, %c4_i32_100 : i32
      %c1_i32_101 = arith.constant 1 : i32
      %282 = arith.addi %281, %c1_i32_101 : i32
      %c16_i32_102 = arith.constant 16 : i32
      %283 = arith.remsi %282, %c16_i32_102 : i32
      %284 = arith.index_cast %283 : i32 to index
      %c0_103 = arith.constant 0 : index
      %c0_104 = arith.constant 0 : index
      %285 = vector.load %arg8[%284, %c0_103, %c0_104] : memref<16x16x128xf32, #tpu.memory_space<vmem>>, vector<1x16x128xf32>
      %286 = vector.shape_cast %285 : vector<1x16x128xf32> to vector<16x128xf32>
      %287 = vector.broadcast %280 : i32 to vector<16x128xi32>
      %288 = arith.cmpi eq, %8, %287 : vector<16x128xi32>
      %289 = arith.mulf %261, %286 : vector<16x128xf32>
      %cst_105 = arith.constant 0.000000e+00 : f32
      %290 = vector.broadcast %cst_105 : f32 to vector<16x128xf32>
      %291 = arith.select %288, %290, %289 : vector<16x128xi1>, vector<16x128xf32>
      %cst_106 = arith.constant dense<0.000000e+00> : vector<128xf32>
      %292 = vector.multi_reduction <add>, %291, %cst_106 [0] : vector<16x128xf32> to vector<128xf32>
      %293 = vector.shape_cast %292 : vector<128xf32> to vector<1x128xf32>
      %294 = arith.index_cast %278 : i32 to index
      %c0_107 = arith.constant 0 : index
      %295 = vector.load %arg2[%294, %c0_107] : memref<24x128xf32, #tpu.memory_space<vmem>>, vector<1x128xf32>
      %296 = arith.addf %295, %263 : vector<1x128xf32>
      %297 = arith.addf %296, %4 : vector<1x128xf32>
      %cst_108 = arith.constant 5.000000e-01 : f32
      %298 = vector.broadcast %cst_108 : f32 to vector<1x128xf32>
      %299 = arith.mulf %297, %298 : vector<1x128xf32>
      %300 = math.tanh %299 : vector<1x128xf32>
      %cst_109 = arith.constant 5.000000e-01 : f32
      %301 = vector.broadcast %cst_109 : f32 to vector<1x128xf32>
      %302 = arith.mulf %300, %301 : vector<1x128xf32>
      %cst_110 = arith.constant 5.000000e-01 : f32
      %303 = vector.broadcast %cst_110 : f32 to vector<1x128xf32>
      %304 = arith.addf %302, %303 : vector<1x128xf32>
      %305 = arith.mulf %304, %3 : vector<1x128xf32>
      %306 = arith.mulf %304, %6 : vector<1x128xf32>
      %307 = arith.addf %306, %5 : vector<1x128xf32>
      %308 = arith.index_cast %278 : i32 to index
      %c0_111 = arith.constant 0 : index
      %309 = vector.load %arg3[%308, %c0_111] : memref<24x128xf32, #tpu.memory_space<vmem>>, vector<1x128xf32>
      %cst_112 = arith.constant 5.000000e-01 : f32
      %310 = vector.broadcast %cst_112 : f32 to vector<1x128xf32>
      %311 = arith.mulf %309, %310 : vector<1x128xf32>
      %312 = arith.addf %307, %311 : vector<1x128xf32>
      %cst_113 = arith.constant 5.000000e-01 : f32
      %313 = vector.broadcast %cst_113 : f32 to vector<1x128xf32>
      %314 = arith.mulf %312, %313 : vector<1x128xf32>
      %315 = math.tanh %314 : vector<1x128xf32>
      %cst_114 = arith.constant 5.000000e-01 : f32
      %316 = vector.broadcast %cst_114 : f32 to vector<1x128xf32>
      %317 = arith.mulf %315, %316 : vector<1x128xf32>
      %cst_115 = arith.constant 5.000000e-01 : f32
      %318 = vector.broadcast %cst_115 : f32 to vector<1x128xf32>
      %319 = arith.addf %317, %318 : vector<1x128xf32>
      %320 = vector.broadcast %280 : i32 to vector<16x128xi32>
      %321 = arith.cmpi eq, %8, %320 : vector<16x128xi32>
      %322 = vector.shape_cast %319 : vector<1x128xf32> to vector<1x128xf32>
      %323 = vector.broadcast %322 : vector<1x128xf32> to vector<16x128xf32>
      %324 = arith.select %321, %323, %261 : vector<16x128xi1>, vector<16x128xf32>
      %325 = arith.mulf %319, %7 : vector<1x128xf32>
      %326 = arith.addf %293, %325 : vector<1x128xf32>
      %c4_i32_116 = arith.constant 4 : i32
      %327 = vector.broadcast %c4_i32_116 : i32 to vector<8x128xi32>
      %328 = arith.cmpi eq, %9, %327 : vector<8x128xi32>
      %329 = vector.shape_cast %305 : vector<1x128xf32> to vector<1x128xf32>
      %330 = vector.broadcast %329 : vector<1x128xf32> to vector<8x128xf32>
      %331 = arith.select %328, %330, %268 : vector<8x128xi1>, vector<8x128xf32>
      %332 = vector.shape_cast %319 : vector<1x128xf32> to vector<1x128xf32>
      %333 = vector.broadcast %332 : vector<1x128xf32> to vector<8x128xf32>
      %334 = arith.select %328, %333, %271 : vector<8x128xi1>, vector<8x128xf32>
      %335 = vector.shape_cast %307 : vector<1x128xf32> to vector<1x128xf32>
      %336 = vector.broadcast %335 : vector<1x128xf32> to vector<8x128xf32>
      %337 = arith.select %328, %336, %274 : vector<8x128xi1>, vector<8x128xf32>
      %338 = vector.shape_cast %307 : vector<1x128xf32> to vector<1x128xf32>
      %339 = vector.broadcast %338 : vector<1x128xf32> to vector<8x128xf32>
      %340 = arith.select %328, %339, %277 : vector<8x128xi1>, vector<8x128xf32>
      %c5_i32 = arith.constant 5 : i32
      %341 = arith.addi %24, %c5_i32 : i32
      %c5_i32_117 = arith.constant 5 : i32
      %342 = arith.addi %25, %c5_i32_117 : i32
      %c16_i32_118 = arith.constant 16 : i32
      %343 = arith.remsi %342, %c16_i32_118 : i32
      %c5_i32_119 = arith.constant 5 : i32
      %344 = arith.addi %25, %c5_i32_119 : i32
      %c1_i32_120 = arith.constant 1 : i32
      %345 = arith.addi %344, %c1_i32_120 : i32
      %c16_i32_121 = arith.constant 16 : i32
      %346 = arith.remsi %345, %c16_i32_121 : i32
      %347 = arith.index_cast %346 : i32 to index
      %c0_122 = arith.constant 0 : index
      %c0_123 = arith.constant 0 : index
      %348 = vector.load %arg8[%347, %c0_122, %c0_123] : memref<16x16x128xf32, #tpu.memory_space<vmem>>, vector<1x16x128xf32>
      %349 = vector.shape_cast %348 : vector<1x16x128xf32> to vector<16x128xf32>
      %350 = vector.broadcast %343 : i32 to vector<16x128xi32>
      %351 = arith.cmpi eq, %8, %350 : vector<16x128xi32>
      %352 = arith.mulf %324, %349 : vector<16x128xf32>
      %cst_124 = arith.constant 0.000000e+00 : f32
      %353 = vector.broadcast %cst_124 : f32 to vector<16x128xf32>
      %354 = arith.select %351, %353, %352 : vector<16x128xi1>, vector<16x128xf32>
      %cst_125 = arith.constant dense<0.000000e+00> : vector<128xf32>
      %355 = vector.multi_reduction <add>, %354, %cst_125 [0] : vector<16x128xf32> to vector<128xf32>
      %356 = vector.shape_cast %355 : vector<128xf32> to vector<1x128xf32>
      %357 = arith.index_cast %341 : i32 to index
      %c0_126 = arith.constant 0 : index
      %358 = vector.load %arg2[%357, %c0_126] : memref<24x128xf32, #tpu.memory_space<vmem>>, vector<1x128xf32>
      %359 = arith.addf %358, %326 : vector<1x128xf32>
      %360 = arith.addf %359, %4 : vector<1x128xf32>
      %cst_127 = arith.constant 5.000000e-01 : f32
      %361 = vector.broadcast %cst_127 : f32 to vector<1x128xf32>
      %362 = arith.mulf %360, %361 : vector<1x128xf32>
      %363 = math.tanh %362 : vector<1x128xf32>
      %cst_128 = arith.constant 5.000000e-01 : f32
      %364 = vector.broadcast %cst_128 : f32 to vector<1x128xf32>
      %365 = arith.mulf %363, %364 : vector<1x128xf32>
      %cst_129 = arith.constant 5.000000e-01 : f32
      %366 = vector.broadcast %cst_129 : f32 to vector<1x128xf32>
      %367 = arith.addf %365, %366 : vector<1x128xf32>
      %368 = arith.mulf %367, %3 : vector<1x128xf32>
      %369 = arith.mulf %367, %6 : vector<1x128xf32>
      %370 = arith.addf %369, %5 : vector<1x128xf32>
      %371 = arith.index_cast %341 : i32 to index
      %c0_130 = arith.constant 0 : index
      %372 = vector.load %arg3[%371, %c0_130] : memref<24x128xf32, #tpu.memory_space<vmem>>, vector<1x128xf32>
      %cst_131 = arith.constant 5.000000e-01 : f32
      %373 = vector.broadcast %cst_131 : f32 to vector<1x128xf32>
      %374 = arith.mulf %372, %373 : vector<1x128xf32>
      %375 = arith.addf %370, %374 : vector<1x128xf32>
      %cst_132 = arith.constant 5.000000e-01 : f32
      %376 = vector.broadcast %cst_132 : f32 to vector<1x128xf32>
      %377 = arith.mulf %375, %376 : vector<1x128xf32>
      %378 = math.tanh %377 : vector<1x128xf32>
      %cst_133 = arith.constant 5.000000e-01 : f32
      %379 = vector.broadcast %cst_133 : f32 to vector<1x128xf32>
      %380 = arith.mulf %378, %379 : vector<1x128xf32>
      %cst_134 = arith.constant 5.000000e-01 : f32
      %381 = vector.broadcast %cst_134 : f32 to vector<1x128xf32>
      %382 = arith.addf %380, %381 : vector<1x128xf32>
      %383 = vector.broadcast %343 : i32 to vector<16x128xi32>
      %384 = arith.cmpi eq, %8, %383 : vector<16x128xi32>
      %385 = vector.shape_cast %382 : vector<1x128xf32> to vector<1x128xf32>
      %386 = vector.broadcast %385 : vector<1x128xf32> to vector<16x128xf32>
      %387 = arith.select %384, %386, %324 : vector<16x128xi1>, vector<16x128xf32>
      %388 = arith.mulf %382, %7 : vector<1x128xf32>
      %389 = arith.addf %356, %388 : vector<1x128xf32>
      %c5_i32_135 = arith.constant 5 : i32
      %390 = vector.broadcast %c5_i32_135 : i32 to vector<8x128xi32>
      %391 = arith.cmpi eq, %9, %390 : vector<8x128xi32>
      %392 = vector.shape_cast %368 : vector<1x128xf32> to vector<1x128xf32>
      %393 = vector.broadcast %392 : vector<1x128xf32> to vector<8x128xf32>
      %394 = arith.select %391, %393, %331 : vector<8x128xi1>, vector<8x128xf32>
      %395 = vector.shape_cast %382 : vector<1x128xf32> to vector<1x128xf32>
      %396 = vector.broadcast %395 : vector<1x128xf32> to vector<8x128xf32>
      %397 = arith.select %391, %396, %334 : vector<8x128xi1>, vector<8x128xf32>
      %398 = vector.shape_cast %370 : vector<1x128xf32> to vector<1x128xf32>
      %399 = vector.broadcast %398 : vector<1x128xf32> to vector<8x128xf32>
      %400 = arith.select %391, %399, %337 : vector<8x128xi1>, vector<8x128xf32>
      %401 = vector.shape_cast %370 : vector<1x128xf32> to vector<1x128xf32>
      %402 = vector.broadcast %401 : vector<1x128xf32> to vector<8x128xf32>
      %403 = arith.select %391, %402, %340 : vector<8x128xi1>, vector<8x128xf32>
      %c6_i32 = arith.constant 6 : i32
      %404 = arith.addi %24, %c6_i32 : i32
      %c6_i32_136 = arith.constant 6 : i32
      %405 = arith.addi %25, %c6_i32_136 : i32
      %c16_i32_137 = arith.constant 16 : i32
      %406 = arith.remsi %405, %c16_i32_137 : i32
      %c6_i32_138 = arith.constant 6 : i32
      %407 = arith.addi %25, %c6_i32_138 : i32
      %c1_i32_139 = arith.constant 1 : i32
      %408 = arith.addi %407, %c1_i32_139 : i32
      %c16_i32_140 = arith.constant 16 : i32
      %409 = arith.remsi %408, %c16_i32_140 : i32
      %410 = arith.index_cast %409 : i32 to index
      %c0_141 = arith.constant 0 : index
      %c0_142 = arith.constant 0 : index
      %411 = vector.load %arg8[%410, %c0_141, %c0_142] : memref<16x16x128xf32, #tpu.memory_space<vmem>>, vector<1x16x128xf32>
      %412 = vector.shape_cast %411 : vector<1x16x128xf32> to vector<16x128xf32>
      %413 = vector.broadcast %406 : i32 to vector<16x128xi32>
      %414 = arith.cmpi eq, %8, %413 : vector<16x128xi32>
      %415 = arith.mulf %387, %412 : vector<16x128xf32>
      %cst_143 = arith.constant 0.000000e+00 : f32
      %416 = vector.broadcast %cst_143 : f32 to vector<16x128xf32>
      %417 = arith.select %414, %416, %415 : vector<16x128xi1>, vector<16x128xf32>
      %cst_144 = arith.constant dense<0.000000e+00> : vector<128xf32>
      %418 = vector.multi_reduction <add>, %417, %cst_144 [0] : vector<16x128xf32> to vector<128xf32>
      %419 = vector.shape_cast %418 : vector<128xf32> to vector<1x128xf32>
      %420 = arith.index_cast %404 : i32 to index
      %c0_145 = arith.constant 0 : index
      %421 = vector.load %arg2[%420, %c0_145] : memref<24x128xf32, #tpu.memory_space<vmem>>, vector<1x128xf32>
      %422 = arith.addf %421, %389 : vector<1x128xf32>
      %423 = arith.addf %422, %4 : vector<1x128xf32>
      %cst_146 = arith.constant 5.000000e-01 : f32
      %424 = vector.broadcast %cst_146 : f32 to vector<1x128xf32>
      %425 = arith.mulf %423, %424 : vector<1x128xf32>
      %426 = math.tanh %425 : vector<1x128xf32>
      %cst_147 = arith.constant 5.000000e-01 : f32
      %427 = vector.broadcast %cst_147 : f32 to vector<1x128xf32>
      %428 = arith.mulf %426, %427 : vector<1x128xf32>
      %cst_148 = arith.constant 5.000000e-01 : f32
      %429 = vector.broadcast %cst_148 : f32 to vector<1x128xf32>
      %430 = arith.addf %428, %429 : vector<1x128xf32>
      %431 = arith.mulf %430, %3 : vector<1x128xf32>
      %432 = arith.mulf %430, %6 : vector<1x128xf32>
      %433 = arith.addf %432, %5 : vector<1x128xf32>
      %434 = arith.index_cast %404 : i32 to index
      %c0_149 = arith.constant 0 : index
      %435 = vector.load %arg3[%434, %c0_149] : memref<24x128xf32, #tpu.memory_space<vmem>>, vector<1x128xf32>
      %cst_150 = arith.constant 5.000000e-01 : f32
      %436 = vector.broadcast %cst_150 : f32 to vector<1x128xf32>
      %437 = arith.mulf %435, %436 : vector<1x128xf32>
      %438 = arith.addf %433, %437 : vector<1x128xf32>
      %cst_151 = arith.constant 5.000000e-01 : f32
      %439 = vector.broadcast %cst_151 : f32 to vector<1x128xf32>
      %440 = arith.mulf %438, %439 : vector<1x128xf32>
      %441 = math.tanh %440 : vector<1x128xf32>
      %cst_152 = arith.constant 5.000000e-01 : f32
      %442 = vector.broadcast %cst_152 : f32 to vector<1x128xf32>
      %443 = arith.mulf %441, %442 : vector<1x128xf32>
      %cst_153 = arith.constant 5.000000e-01 : f32
      %444 = vector.broadcast %cst_153 : f32 to vector<1x128xf32>
      %445 = arith.addf %443, %444 : vector<1x128xf32>
      %446 = vector.broadcast %406 : i32 to vector<16x128xi32>
      %447 = arith.cmpi eq, %8, %446 : vector<16x128xi32>
      %448 = vector.shape_cast %445 : vector<1x128xf32> to vector<1x128xf32>
      %449 = vector.broadcast %448 : vector<1x128xf32> to vector<16x128xf32>
      %450 = arith.select %447, %449, %387 : vector<16x128xi1>, vector<16x128xf32>
      %451 = arith.mulf %445, %7 : vector<1x128xf32>
      %452 = arith.addf %419, %451 : vector<1x128xf32>
      %c6_i32_154 = arith.constant 6 : i32
      %453 = vector.broadcast %c6_i32_154 : i32 to vector<8x128xi32>
      %454 = arith.cmpi eq, %9, %453 : vector<8x128xi32>
      %455 = vector.shape_cast %431 : vector<1x128xf32> to vector<1x128xf32>
      %456 = vector.broadcast %455 : vector<1x128xf32> to vector<8x128xf32>
      %457 = arith.select %454, %456, %394 : vector<8x128xi1>, vector<8x128xf32>
      %458 = vector.shape_cast %445 : vector<1x128xf32> to vector<1x128xf32>
      %459 = vector.broadcast %458 : vector<1x128xf32> to vector<8x128xf32>
      %460 = arith.select %454, %459, %397 : vector<8x128xi1>, vector<8x128xf32>
      %461 = vector.shape_cast %433 : vector<1x128xf32> to vector<1x128xf32>
      %462 = vector.broadcast %461 : vector<1x128xf32> to vector<8x128xf32>
      %463 = arith.select %454, %462, %400 : vector<8x128xi1>, vector<8x128xf32>
      %464 = vector.shape_cast %433 : vector<1x128xf32> to vector<1x128xf32>
      %465 = vector.broadcast %464 : vector<1x128xf32> to vector<8x128xf32>
      %466 = arith.select %454, %465, %403 : vector<8x128xi1>, vector<8x128xf32>
      %c7_i32 = arith.constant 7 : i32
      %467 = arith.addi %24, %c7_i32 : i32
      %c7_i32_155 = arith.constant 7 : i32
      %468 = arith.addi %25, %c7_i32_155 : i32
      %c16_i32_156 = arith.constant 16 : i32
      %469 = arith.remsi %468, %c16_i32_156 : i32
      %c7_i32_157 = arith.constant 7 : i32
      %470 = arith.addi %25, %c7_i32_157 : i32
      %c1_i32_158 = arith.constant 1 : i32
      %471 = arith.addi %470, %c1_i32_158 : i32
      %c16_i32_159 = arith.constant 16 : i32
      %472 = arith.remsi %471, %c16_i32_159 : i32
      %473 = arith.index_cast %472 : i32 to index
      %c0_160 = arith.constant 0 : index
      %c0_161 = arith.constant 0 : index
      %474 = vector.load %arg8[%473, %c0_160, %c0_161] : memref<16x16x128xf32, #tpu.memory_space<vmem>>, vector<1x16x128xf32>
      %475 = vector.shape_cast %474 : vector<1x16x128xf32> to vector<16x128xf32>
      %476 = vector.broadcast %469 : i32 to vector<16x128xi32>
      %477 = arith.cmpi eq, %8, %476 : vector<16x128xi32>
      %478 = arith.mulf %450, %475 : vector<16x128xf32>
      %cst_162 = arith.constant 0.000000e+00 : f32
      %479 = vector.broadcast %cst_162 : f32 to vector<16x128xf32>
      %480 = arith.select %477, %479, %478 : vector<16x128xi1>, vector<16x128xf32>
      %cst_163 = arith.constant dense<0.000000e+00> : vector<128xf32>
      %481 = vector.multi_reduction <add>, %480, %cst_163 [0] : vector<16x128xf32> to vector<128xf32>
      %482 = vector.shape_cast %481 : vector<128xf32> to vector<1x128xf32>
      %483 = arith.index_cast %467 : i32 to index
      %c0_164 = arith.constant 0 : index
      %484 = vector.load %arg2[%483, %c0_164] : memref<24x128xf32, #tpu.memory_space<vmem>>, vector<1x128xf32>
      %485 = arith.addf %484, %452 : vector<1x128xf32>
      %486 = arith.addf %485, %4 : vector<1x128xf32>
      %cst_165 = arith.constant 5.000000e-01 : f32
      %487 = vector.broadcast %cst_165 : f32 to vector<1x128xf32>
      %488 = arith.mulf %486, %487 : vector<1x128xf32>
      %489 = math.tanh %488 : vector<1x128xf32>
      %cst_166 = arith.constant 5.000000e-01 : f32
      %490 = vector.broadcast %cst_166 : f32 to vector<1x128xf32>
      %491 = arith.mulf %489, %490 : vector<1x128xf32>
      %cst_167 = arith.constant 5.000000e-01 : f32
      %492 = vector.broadcast %cst_167 : f32 to vector<1x128xf32>
      %493 = arith.addf %491, %492 : vector<1x128xf32>
      %494 = arith.mulf %493, %3 : vector<1x128xf32>
      %495 = arith.mulf %493, %6 : vector<1x128xf32>
      %496 = arith.addf %495, %5 : vector<1x128xf32>
      %497 = arith.index_cast %467 : i32 to index
      %c0_168 = arith.constant 0 : index
      %498 = vector.load %arg3[%497, %c0_168] : memref<24x128xf32, #tpu.memory_space<vmem>>, vector<1x128xf32>
      %cst_169 = arith.constant 5.000000e-01 : f32
      %499 = vector.broadcast %cst_169 : f32 to vector<1x128xf32>
      %500 = arith.mulf %498, %499 : vector<1x128xf32>
      %501 = arith.addf %496, %500 : vector<1x128xf32>
      %cst_170 = arith.constant 5.000000e-01 : f32
      %502 = vector.broadcast %cst_170 : f32 to vector<1x128xf32>
      %503 = arith.mulf %501, %502 : vector<1x128xf32>
      %504 = math.tanh %503 : vector<1x128xf32>
      %cst_171 = arith.constant 5.000000e-01 : f32
      %505 = vector.broadcast %cst_171 : f32 to vector<1x128xf32>
      %506 = arith.mulf %504, %505 : vector<1x128xf32>
      %cst_172 = arith.constant 5.000000e-01 : f32
      %507 = vector.broadcast %cst_172 : f32 to vector<1x128xf32>
      %508 = arith.addf %506, %507 : vector<1x128xf32>
      %509 = vector.broadcast %469 : i32 to vector<16x128xi32>
      %510 = arith.cmpi eq, %8, %509 : vector<16x128xi32>
      %511 = vector.shape_cast %508 : vector<1x128xf32> to vector<1x128xf32>
      %512 = vector.broadcast %511 : vector<1x128xf32> to vector<16x128xf32>
      %513 = arith.select %510, %512, %450 : vector<16x128xi1>, vector<16x128xf32>
      %514 = arith.mulf %508, %7 : vector<1x128xf32>
      %515 = arith.addf %482, %514 : vector<1x128xf32>
      %c7_i32_173 = arith.constant 7 : i32
      %516 = vector.broadcast %c7_i32_173 : i32 to vector<8x128xi32>
      %517 = arith.cmpi eq, %9, %516 : vector<8x128xi32>
      %518 = vector.shape_cast %494 : vector<1x128xf32> to vector<1x128xf32>
      %519 = vector.broadcast %518 : vector<1x128xf32> to vector<8x128xf32>
      %520 = arith.select %517, %519, %457 : vector<8x128xi1>, vector<8x128xf32>
      %521 = vector.shape_cast %508 : vector<1x128xf32> to vector<1x128xf32>
      %522 = vector.broadcast %521 : vector<1x128xf32> to vector<8x128xf32>
      %523 = arith.select %517, %522, %460 : vector<8x128xi1>, vector<8x128xf32>
      %524 = vector.shape_cast %496 : vector<1x128xf32> to vector<1x128xf32>
      %525 = vector.broadcast %524 : vector<1x128xf32> to vector<8x128xf32>
      %526 = arith.select %517, %525, %463 : vector<8x128xi1>, vector<8x128xf32>
      %527 = vector.shape_cast %496 : vector<1x128xf32> to vector<1x128xf32>
      %528 = vector.broadcast %527 : vector<1x128xf32> to vector<8x128xf32>
      %529 = arith.select %517, %528, %466 : vector<8x128xi1>, vector<8x128xf32>
      %530 = arith.index_cast %24 : i32 to index
      %c0_174 = arith.constant 0 : index
      %531 = vector.load %arg10[%530, %c0_174] : memref<24x128xf32, #tpu.memory_space<vmem>>, vector<8x128xf32>
      tpu.vector_store %arg10[%530, %c0_174], %520 {strides = array<i32>} : memref<24x128xf32, #tpu.memory_space<vmem>>, vector<8x128xf32>,
      %532 = arith.index_cast %24 : i32 to index
      %c0_175 = arith.constant 0 : index
      %533 = vector.load %arg11[%532, %c0_175] : memref<24x128xf32, #tpu.memory_space<vmem>>, vector<8x128xf32>
      tpu.vector_store %arg11[%532, %c0_175], %523 {strides = array<i32>} : memref<24x128xf32, #tpu.memory_space<vmem>>, vector<8x128xf32>,
      %534 = arith.index_cast %24 : i32 to index
      %c0_176 = arith.constant 0 : index
      %535 = vector.load %arg12[%534, %c0_176] : memref<24x128xf32, #tpu.memory_space<vmem>>, vector<8x128xf32>
      tpu.vector_store %arg12[%534, %c0_176], %526 {strides = array<i32>} : memref<24x128xf32, #tpu.memory_space<vmem>>, vector<8x128xf32>,
      %536 = arith.index_cast %24 : i32 to index
      %c0_177 = arith.constant 0 : index
      %537 = vector.load %arg13[%536, %c0_177] : memref<24x128xf32, #tpu.memory_space<vmem>>, vector<8x128xf32>
      tpu.vector_store %arg13[%536, %c0_177], %529 {strides = array<i32>} : memref<24x128xf32, #tpu.memory_space<vmem>>, vector<8x128xf32>,
      scf.yield %513, %515 : vector<16x128xf32>, vector<1x128xf32>
    }
    %c3_i32_16 = arith.constant 3 : i32
    %c0_17 = arith.constant 0 : index
    %c0_18 = arith.constant 0 : index
    %22 = vector.load %arg14[%c0_17, %c0_18] : memref<16x128xf32, #tpu.memory_space<vmem>>, vector<16x128xf32>
    tpu.vector_store %arg14[%c0_17, %c0_18], %21#0 {strides = array<i32>} : memref<16x128xf32, #tpu.memory_space<vmem>>, vector<16x128xf32>,
    return
  }
  func.func @transform_0(%arg0: i32, %arg1: i32) -> (i32, i32) {
    %c0_i32 = arith.constant 0 : i32
    return %arg1, %arg0 : i32, i32
  }
  func.func @transform_1(%arg0: i32, %arg1: i32) -> (i32, i32) {
    %c0_i32 = arith.constant 0 : i32
    return %arg1, %arg0 : i32, i32
  }
  func.func @transform_2(%arg0: i32, %arg1: i32) -> (i32, i32) {
    %c0_i32 = arith.constant 0 : i32
    %c0_i32_0 = arith.constant 0 : i32
    return %c0_i32, %arg0 : i32, i32
  }
  func.func @transform_3(%arg0: i32, %arg1: i32) -> (i32, i32) {
    %c0_i32 = arith.constant 0 : i32
    %c0_i32_0 = arith.constant 0 : i32
    return %c0_i32, %arg0 : i32, i32
  }
  func.func @transform_4(%arg0: i32, %arg1: i32) -> (i32, i32) {
    %c0_i32 = arith.constant 0 : i32
    %c0_i32_0 = arith.constant 0 : i32
    return %c0_i32, %arg0 : i32, i32
  }
  func.func @transform_5(%arg0: i32, %arg1: i32) -> (i32, i32) {
    %c0_i32 = arith.constant 0 : i32
    %c0_i32_0 = arith.constant 0 : i32
    return %c0_i32, %arg0 : i32, i32
  }
  func.func @transform_6(%arg0: i32, %arg1: i32) -> (i32, i32, i32) {
    %c0_i32 = arith.constant 0 : i32
    %c0_i32_0 = arith.constant 0 : i32
    %c0_i32_1 = arith.constant 0 : i32
    return %c0_i32, %c0_i32_0, %arg0 : i32, i32, i32
  }
  func.func @transform_7(%arg0: i32, %arg1: i32) -> (i32, i32) {
    %c0_i32 = arith.constant 0 : i32
    %c0_i32_0 = arith.constant 0 : i32
    return %c0_i32, %arg0 : i32, i32
  }
  func.func @transform_8(%arg0: i32, %arg1: i32) -> (i32, i32) {
    %c0_i32 = arith.constant 0 : i32
    return %arg1, %arg0 : i32, i32
  }
  func.func @transform_9(%arg0: i32, %arg1: i32) -> (i32, i32) {
    %c0_i32 = arith.constant 0 : i32
    return %arg1, %arg0 : i32, i32
  }
  func.func @transform_10(%arg0: i32, %arg1: i32) -> (i32, i32) {
    %c0_i32 = arith.constant 0 : i32
    return %arg1, %arg0 : i32, i32
  }
  func.func @transform_11(%arg0: i32, %arg1: i32) -> (i32, i32) {
    %c0_i32 = arith.constant 0 : i32
    return %arg1, %arg0 : i32, i32
  }
}

</mosaic_0001>

<bundles_post_ra>
// kernel: tpu_custom_call.1
= control target key start
LH: loop header
LB: loop body
LE: loop exit
PB: predicated region body
PF: predicated region fallthrough
CT: control target
= control target key end

     0   :  { %s2839_s0 = inlined_call_operand.hbm [shape: f32[72,128], index: 0, kind: input, shape index: {}]   ;;  %s2840_s1 = inlined_call_operand.hbm [shape: f32[72,128], index: 1, kind: input, shape index: {}]   ;;  %s2841_s2 = inlined_call_operand.vmem [shape: f32[1,128], index: 2, kind: input, shape index: {}]   ;;  %s2842_s3 = inlined_call_operand.vmem [shape: f32[1,128], index: 3, kind: input, shape index: {}]   ;;  %s2843_s4 = inlined_call_operand.vmem [shape: f32[1,128], index: 4, kind: input, shape index: {}]   ;;  %s2844_s5 = inlined_call_operand.vmem [shape: f32[1,128], index: 5, kind: input, shape index: {}]   ;;  %s2845_s6 = inlined_call_operand.hbm [shape: f32[16,16,128], index: 6, kind: input, shape index: {}]   ;;  %s2846_s7 = inlined_call_operand.vmem [shape: f32[1,128], index: 7, kind: input, shape index: {}]   ;;  %s2847_s8 = inlined_call_operand.hbm [shape: f32[72,128], index: 8, kind: output, shape index: {0}]   ;;  %s2848_s9 = inlined_call_operand.hbm [shape: f32[72,128], index: 9, kind: output, shape index: {1}]   ;;  %s2849_s10 = inlined_call_operand.hbm [shape: f32[72,128], index: 10, kind: output, shape index: {2}]   ;;  %s2850_s11 = inlined_call_operand.hbm [shape: f32[72,128], index: 11, kind: output, shape index: {3}]  }
   0x1   :  { %2870 = sst [smem:[#allocation28_spill]] %s2839_s0 }
   0x2   :  { %2871 = sst [smem:[#allocation29_spill]] %s2840_s1 }
   0x3   :  { %2872 = sst [smem:[#allocation30_spill]] %s2845_s6 }
   0x4   :  { %2873 = sst [smem:[#allocation31_spill]] %s2847_s8 }
   0x5   :  { %2874 = sst [smem:[#allocation32_spill]] %s2848_s9 }
   0x6   :  { %2875 = sst [smem:[#allocation33_spill]] %s2849_s10 }
   0x7   :  { %2876 = sst [smem:[#allocation34_spill]] %s2850_s11 }
   0x8   :  { %17 = vsyncpa [#allocation4], 0 }
   0x9   :  { %19 = vsyncpa [#allocation4 + $0x1], 0 }
   0xa   :  { %20 = vsyncpa [#allocation7], 0 }
   0xb   :  { %22 = vsyncpa [#allocation7 + $0x1], 0 }
   0xc   :  { %23 = vsyncpa [#allocation5], 0 }
   0xd   :  { %25 = vsyncpa [#allocation5 + $0x1], 0 }
   0xe   :  { %26 = vsyncpa [#allocation11], 0 }
   0xf   :  { %28 = vsyncpa [#allocation11 + $0x1], 0 }
  0x10   :  { %29 = vsyncpa [#allocation14], 0 }
  0x11   :  { %31 = vsyncpa [#allocation14 + $0x1], 0  ;;  %s2179_s17 = smov 0   ;;  %s2181_s18 = smov 0  }
  0x12   :  { %s2183_s19 = smov 0   ;;  %s2185_s20 = smov 0  }
  0x13   :  { %s2187_s21 = smov 0   ;;  %s2189_s22 = smov 0  }
  0x14 LB: > { %2877 = sst [smem:[#allocation21_spill]] %s2075_s17  ;;  %s2210_s23 = sadd.s32 4294967295, %s2095_s22   ;;  %s2095_s22 = sphi %s2189_s22, %s37_s22   ;;  %s2091_s21 = sphi %s2187_s21, %s2945_s21   ;;  %s2087_s20 = sphi %s2185_s20, %s2944_s20   ;;  %s2083_s19 = sphi %s2183_s19, %s2943_s19   ;;  %s2079_s18 = sphi %s2181_s18, %s2947_s18   ;;  %s2075_s17 = sphi %s2179_s17, %s2946_s17  }
  0x15   : > { %2878 = sst [smem:[#allocation22_spill]] %s2083_s19  ;;  %s2851_s24 = sadd.s32 4294967294, %s2095_s22  }
  0x16   : > { %2879 = sst [smem:[#allocation23_spill]] %s2091_s21  ;;  %p71_p0 = scmp.ne.s32.totalorder %s2079_s18, %s2075_s17 }
  0x17   : > { %p72_p1 = scmp.eq.s32.totalorder %s2210_s23, 0  ;;  %p281_p2 = scmp.eq.s32.totalorder %s2210_s23, 2 }
  0x18   : > { %p287_p3 = scmp.eq.s32.totalorder %s2851_s24, 2  ;;  %p1569_p5 = scmp.ge.s32.totalorder %s2095_s22, 1 }
  0x19   : > { %p2221_p4 = por %p72_p1, %p71_p0  ;;  %p378_p7 = scmp.lt.s32.totalorder %s2095_s22, 4 }
  0x1a   : > { %p2226_p6 = por %p287_p3, %p71_p0  ;;  %s2883_s6 = sld [smem:[#allocation30_spill]] }
  0x1b   : > { %p2234_p8 = pnand %p1569_p5, %p378_p7  ;;  %s2113_s12 = smov [#allocation8]  }
  0x1c   : > { %s2881_s26 = scalar_select %p2226_p6, 1, 0 }
  0x1d   : > { %p1661_p9 = pneg %p2234_p8  ;;  %s417_s13 = sshll.u32 %s2113_s12, 4  ;;  %s418_s13 = int_to_ptr.vmem [resolvable:$true] %s417_s13 }
  0x1e   : > { %2882 = sst [smem:[#allocation24_spill]] %s2881_s26  ;;  %s2852_s14 = smov 128  }
  0x1f   : > { %p1662_p10 = pnand %p1661_p9, %p72_p1  ;;  %s2854_s15 = smov 8  }
  0x20   : > { %s415_s29 = sshll.u32 %s2883_s6, 4  ;;  %s46_s16 = sadd.s32 1, %s2091_s21  ;;  %s416_s29 = int_to_ptr.hbm [resolvable:$true] %s415_s29 }
  0x21   : > { %1664 = dma.hbm_to_vmem [thread:$0]  (!%p1662_p10), %s416_s29, 4096, %s418_s13, [#allocation7], %s2852_s14, %s2852_s14, %s2854_s15  }
  0x22   : > { %p47_p11 = scmp.ge.s32.totalorder %s46_s16, 3  ;;  %s58_s27 = sadd.s32 1, %s2083_s19 }
  0x23   : > { %p65_p12 = scmp.ne.s32.totalorder %s2083_s19, %s2079_s18  ;;  %p66_p13 = scmp.eq.s32.totalorder %s2095_s22, 0 }
  0x24   : > { %s2949_s16 = smov (%p47_p11, %s46_s16), 0  ;;  %p1686_p5 = scmp.lt.s32.totalorder %s2095_s22, 3 }
  0x25   : > { %2885 = sst [smem:[#allocation25_spill]] %s2949_s16  ;;  %p67_p0 = por %p66_p13, %p65_p12 }
  0x26   : > { %p2254_p3 = por %p281_p2, %p65_p12  ;;  %s53_s12 = ssub.s32 %s2091_s21, %s2949_s16 }
  0x27   : > { %p56_p7 = scmp.eq.s32.totalorder %s53_s12, 0  ;;  %s437_s24 = sand.u32 1, %s2083_s19  }
  0x28   : > { %s2886_s28 = scalar_select %p2254_p3, 1, 0 }
  0x29   : > { %s1642_s29 = smul.u32 24, %s437_s24  ;;  %p2266_p9 = pnand %p1686_p5, %p67_p0 }
  0x2a   : > { %2887 = sst [smem:[#allocation26_spill]] %s2886_s28  ;;  %s1636_s14 = smul.u32 24, %s2091_s21 }
  0x2b   : > { %s2263_s13 = scalar_select %p56_p7, %s2083_s19, %s58_s27  }
  0x2c   : > { %s441_s15 = scalar_lea.vmem [#allocation3], %s1642_s29  ;;  %s2890_s0 = sld [smem:[#allocation28_spill]] }
  0x2d   : > { %2888 = sst [smem:[#allocation27_spill]] %s2263_s13  ;;  %s450_s6 = sshll.u32 %s441_s15, 4  ;;  %s451_s6 = int_to_ptr.vmem [resolvable:$true] %s450_s6 }
  0x2e   : > { %s460_s12 = sand.u32 1, %s2095_s22   ;;  %s438_s8 = scalar_lea.sflag [#allocation4], %s437_s24 }
  0x2f   : > { %s2891_s27 = smov 8   ;;  %s2892_s21 = smov 128  }
  0x30   : > { %s2893_s1 = sld [smem:[#allocation29_spill]]  ;;  %s464_s28 = scalar_lea.vmem [#allocation6], %s1642_s29 }
  0x31   : > { %s473_s9 = sshll.u32 %s464_s28, 4  ;;  %s461_s17 = scalar_lea.sflag [#allocation7], %s460_s12  ;;  %s474_s9 = int_to_ptr.vmem [resolvable:$true] %s473_s9 }
  0x32   : > { %s447_s10 = scalar_lea.hbm %s2890_s0, %s1636_s14 }
  0x33   : > { %s448_s16 = sshll.u32 %s447_s10, 4  ;;  %s449_s16 = int_to_ptr.hbm [resolvable:$true] %s448_s16 }
  0x34   : > { %1668 = dma.hbm_to_vmem [thread:$0]  (!%p2266_p9), %s449_s16, 384, %s451_s6, %s438_s8, %s2892_s21, %s2892_s21, %s2891_s27  }
  0x35   : > { %485 = sbr.rel (%p2234_p8) target bundleno = 493 (0x1ed), region = 52  ;;  %s2290_s6 = sand.u32 (!%p2234_p8), 1, %s2079_s18  }
  0x36   : > { %s470_s19 = scalar_lea.hbm %s2893_s1, %s1636_s14  ;;  %s2293_s8 = smul.u32 (!%p2234_p8), 24, %s2290_s6 }
  0x37   : > { %s471_s11 = sshll.u32 %s470_s19, 4  ;;  %s488_s10 = scalar_lea.sflag (!%p2234_p8), [#allocation4], %s2290_s6  ;;  %s472_s11 = int_to_ptr.hbm [resolvable:$true] %s471_s11 }
  0x38   : > { %1671 = dma.hbm_to_vmem [thread:$0]  (!%p2266_p9), %s472_s11, 384, %s474_s9, %s461_s17, %s2892_s21, %s2892_s21, %s2891_s27  }
  0x3a   : > { %2050 = dma.done.wait (%p2221_p4), %s488_s10, 384  }
  0x3b   : > { %2052 = vsyncadd (%p2221_p4), %s488_s10, 4294966912  ;;  %s2867_s9 = sand.u32 1, %s2210_s23   ;;  %s501_s24 = scalar_lea.vmem [#allocation6], %s2293_s8 }
  0x3c   : > { %s498_s21 = scalar_lea.sflag [#allocation7], %s2867_s9 }
  0x3d   : > { %2054 = dma.done.wait (%p2221_p4), %s498_s21, 384  }
  0x3e   : > { %2056 = vsyncadd (%p2221_p4), %s498_s21, 4294966912 }
  0x3f   : > { %2058 = dma.done.wait (%p72_p1), [#allocation7], 4096  }
  0x40   : > { %2060 = vsyncadd (%p72_p1), [#allocation7], 4294963200  ;;  %s559_s26 = scalar_lea.vmem [#allocation9], %s2293_s8  ;;  %s566_s30 = scalar_lea.vmem [#allocation10], %s2293_s8 }
  0x41   : > { %s2869_s14 = scalar_lea.vmem [#allocation12], %s2293_s8  ;;  %s2868_s16 = scalar_lea.vmem [#allocation13], %s2293_s8 }
  0x42   : > { %p1581_p2 = scmp.ne.s32.totalorder %s2087_s20, 0 }
  0x44   : > { %605 = sbr.rel (%p1581_p2) target bundleno = 76 (0x4c), region = 68 }
  0x49   : > { %v2116_v0 = vmov 0.0  }
  0x4a   : > { %606 = vst [vmem:[#allocation2] sm:$0xff] %v2116_v0 }
  0x4b   : > { %607 = vst [vmem:[#allocation2 + $0x8] sm:$0xff] %v2116_v0 }
  0x4c PF: > { %v2321_v1 = vld [vmem:[%s2841_s2] sm:$0x1]  ;;  %v613_v4 = vlaneseq  ;;  %s2344_s21 = smul.u32 24, %s2087_s20  ;;  %s2360_s20 = smov 0  }
  0x4d   : > { %v2326_v2 = vld [vmem:[%s2842_s3] sm:$0x1] }
  0x4e   : > { %v2331_v3 = vld [vmem:[%s2843_s4] sm:$0x1]  ;;  %v2346_v7 = vshrl.u32 %v613_v4, 7  ;;  %p619_p1 = scmp.lt.s32.totalorder %s2344_s21, 0  ;;  %s620_s25 = ssub.s32 0, %s2344_s21 }
  0x4f   : > { %v2336_v5 = vld [vmem:[%s2844_s5] sm:$0x1]  ;;  %s1582_s28 = smin.u32 %s620_s25, %s2344_s21 }
  0x50   : > { %v2341_v6 = vld [vmem:[%s2846_s7] sm:$0x1]  ;;  %v2351_v8 = vadd.s32 8, %v2346_v7  ;;  %s622_s29 = sand.u32 15, %s1582_s28  }
  0x51   : > { %s623_s13 = ssub.s32 0, %s622_s29  ;;  %v617_v9 = vld [vmem:[#allocation2] sm:$0xff]  }
  0x52   : > { %s2951_s13 = smov (!%p619_p1, %s623_s13), %s622_s29  ;;  %v618_v10 = vld [vmem:[#allocation2 + $0x8] sm:$0xff]  }
  0x53   : > { %s1583_s12 = sshll.u32 %s2951_s13, 4 }
  0x54   : > { %s626_s27 = scalar_lea.vmem [#allocation8], %s1583_s12 }
  0x55   : > { %v627_v11 = vld [vmem:[%s626_s27] sm:$0xff]  ;;  %v628_v12 = vld [vmem:[%s626_s27 + $0x8] sm:$0xff] }
  0x56   : > { %v629_v13 = vmul.f32 %v627_v11, %v617_v9  ;;  %v630_v14 = vmul.f32 %v628_v12, %v618_v10 }
  0x58   : > { %v631_v15 = vadd.f32 %v630_v14, %v629_v13 }
  0x5a   : > { %v632_v16 = vrot.slane %v631_v15, 4 }
  0x5c   : > { %v633_v17 = vadd.f32 %v632_v16, %v631_v15 }
  0x5e   : > { %v634_v18 = vrot.slane %v633_v17, 2 }
  0x60   : > { %v635_v19 = vadd.f32 %v634_v18, %v633_v17 }
  0x62   : > { %v636_v20 = vrot.slane %v635_v19, 1 }
  0x64   : > { %v637_v21 = vadd.f32 %v636_v20, %v635_v19  }
  0x65 LB: >> { %s2373_s15 = sshll.u32 %s2111_s20, 3  ;;  %s2894_s19 = scalar_lea.vmem [#allocation3], %s2293_s8  ;;  %vm704_vm4 = vcmp.eq.s32.totalorder %v2346_v7, 0  ;;  %vm760_vm5 = vcmp.eq.s32.totalorder %v2346_v7, 1  ;;  %vm816_vm8 = vcmp.eq.s32.totalorder %v2346_v7, 2  ;;  %vm872_vm11 = vcmp.eq.s32.totalorder %v2346_v7, 3  ;;  %s2111_s20 = sphi %s2360_s20, %s643_s20   ;;  %v2107_v9 = vphi %v617_v9, %v2929_v9   ;;  %v2103_v10 = vphi %v618_v10, %v2928_v10   ;;  %v2099_v21 = vphi %v637_v21, %v2927_v21  }
  0x66   : >> { %s2377_s11 = sadd.s32 %s2373_s15, %s2344_s21  ;;  %s2382_s17 = scalar_lea.vmem %s2894_s19, %s2373_s15 [#allocation3]  ;;  %vm928_vm14 = vcmp.eq.s32.totalorder %v2346_v7, 4 }
  0x67   : >> { %p649_p4 = scmp.lt.s32.totalorder %s2377_s11, 0  ;;  %s650_s10 = ssub.s32 0, %s2377_s11  ;;  %v681_v22 = vld [vmem:[%s2382_s17] sm:$0x1]  ;;  %v1591_v56 = vld [vmem:[%s2382_s17 + $0x1] sm:$0x1] }
  0x68   : >> { %s1585_s25 = smin.u32 %s650_s10, %s2377_s11  ;;  %s655_s28 = sadd.s32 1, %s2377_s11  ;;  %v682_v23 = vadd.f32 %v2099_v21, %v681_v22 }
  0x69   : >> { %s652_s29 = sand.u32 15, %s1585_s25   ;;  %p656_p8 = scmp.lt.s32.totalorder %s655_s28, 0 }
  0x6a   : >> { %s653_s13 = ssub.s32 0, %s652_s29  ;;  %s657_s12 = ssub.s32 0, %s655_s28  ;;  %v683_v24 = vadd.f32 %v682_v23, %v2326_v2 }
  0x6b   : >> { %s2953_s13 = smov (!%p649_p4, %s653_s13), %s652_s29  ;;  %s1586_s27 = smin.u32 %s657_s12, %s655_s28 }
  0x6c   : >> { %v684_v25 = vmul.f32 0.5, %v683_v24  ;;  %s659_s19 = sand.u32 15, %s1586_s27   ;;  %v666_v26 = vstv %s2953_s13  ;;  %s711_s28 = sadd.s32 2, %s2377_s11 }
  0x6d   : >> { %s660_s9 = ssub.s32 0, %s659_s19  ;;  %vm2394_vm0 = vcmp.eq.s32.totalorder %v2346_v7, %v666_v26  ;;  %vm2399_vm1 = vcmp.eq.s32.totalorder %v2351_v8, %v666_v26  ;;  %s713_s29 = ssub.s32 0, %s711_s28 }
  0x6e   : >> { %1775 = vtanh.f32 %v684_v25  ;;  %s2955_s9 = smov (!%p656_p8, %s660_s9), %s659_s19  ;;  %s2406_s19 = scalar_lea.vmem %s501_s24, %s2373_s15 [#allocation6] }
  0x6f   : >> { %s1587_s10 = sshll.u32 %s2955_s9, 4  ;;  %v692_v37 = vld [vmem:[%s2406_s19] sm:$0x1]  ;;  %s1588_s13 = smin.u32 %s713_s29, %s711_s28  ;;  %v722_v63 = vstv %s2955_s9  ;;  %v1593_v21 = vld [vmem:[%s2406_s19 + $0x1] sm:$0x1] }
  0x70   : >> { %s663_s25 = scalar_lea.vmem [#allocation8], %s1587_s10  ;;  %v693_v42 = vmul.f32 0.5, %v692_v37  ;;  %s715_s12 = sand.u32 15, %s1588_s13   ;;  %vm2438_vm2 = vcmp.eq.s32.totalorder %v2346_v7, %v722_v63  ;;  %vm2443_vm3 = vcmp.eq.s32.totalorder %v2351_v8, %v722_v63  ;;  %v749_v26 = vmul.f32 0.5, %v1593_v21 }
  0x71   : >> { %v664_v27 = vld [vmem:[%s663_s25] sm:$0xff]  ;;  %v665_v28 = vld [vmem:[%s663_s25 + $0x8] sm:$0xff]  ;;  %p712_p10 = scmp.lt.s32.totalorder %s711_s28, 0  ;;  %s716_s27 = ssub.s32 0, %s715_s12 }
  0x72   : >> { %v669_v32 = vmul.f32 %v2107_v9, %v664_v27  ;;  %v670_v33 = vmul.f32 %v2103_v10, %v665_v28  ;;  %s767_s9 = sadd.s32 3, %s2377_s11  ;;  %s643_s20 = sadd.s32 1, %s2111_s20  }
  0x73   : >> { %s2957_s27 = smov (!%p712_p10, %s716_s27), %s715_s12  ;;  %s769_s28 = ssub.s32 0, %s767_s9 }
  0x74   : >> { %v1776_v31 = vpop.eup %1775  ;;  %v671_v35 = vsel %vm2394_vm0, 0.0, %v669_v32  ;;  %v672_v36 = vsel %vm2399_vm1, 0.0, %v670_v33  ;;  %s1589_s10 = sshll.u32 %s2957_s27, 4  ;;  %s1594_s29 = smin.u32 %s769_s28, %s767_s9 }
  0x75   : >> { %v686_v34 = vmul.f32 0.5, %v1776_v31  ;;  %v673_v38 = vadd.f32 %v672_v36, %v671_v35  ;;  %s719_s25 = scalar_lea.vmem [#allocation8], %s1589_s10  ;;  %s771_s13 = sand.u32 15, %s1594_s29  }
  0x76   : >> { %v720_v60 = vld [vmem:[%s719_s25] sm:$0xff]  ;;  %v721_v61 = vld [vmem:[%s719_s25 + $0x8] sm:$0xff]  ;;  %p768_p11 = scmp.lt.s32.totalorder %s767_s9, 0  ;;  %s772_s12 = ssub.s32 0, %s771_s13 }
  0x77   : >> { %v687_v39 = vadd.f32 0.5, %v686_v34  ;;  %v674_v40 = vrot.slane %v673_v38, 4  ;;  %p640_p9 = scmp.ge.s32.totalorder %s643_s20, 3  }
  0x78   : >> { %s2959_s12 = smov (!%p768_p11, %s772_s12), %s771_s13 }
  0x79   : >> { %v689_v41 = vmul.f32 %v687_v39, %v2336_v5  ;;  %v675_v43 = vadd.f32 %v674_v40, %v673_v38  ;;  %v688_v15 = vmul.f32 %v687_v39, %v2321_v1  ;;  %s1595_s10 = sshll.u32 %s2959_s12, 4 }
  0x7a   : >> { %s775_s25 = scalar_lea.vmem [#allocation8], %s1595_s10 }
  0x7b   : >> { %v690_v44 = vadd.f32 %v689_v41, %v2331_v3  ;;  %v676_v46 = vrot.slane %v675_v43, 2  ;;  %v705_v19 = vperm.slane %v688_v15, 0 }
  0x7d   : >> { %v694_v45 = vadd.f32 %v693_v42, %v690_v44  ;;  %v677_v48 = vadd.f32 %v676_v46, %v675_v43  ;;  %v708_v23 = vperm.slane %v690_v44, 0  ;;  %v706_v27 = vsel %vm704_vm4, %v705_v19, 0.0 }
  0x7f   : >> { %v695_v47 = vmul.f32 0.5, %v694_v45  ;;  %v678_v49 = vrot.slane %v677_v48, 1  ;;  %v709_v31 = vsel %vm704_vm4, %v708_v23, 0.0 }
  0x81   : >> { %1777 = vtanh.f32 %v695_v47  ;;  %v679_v52 = vadd.f32 %v678_v49, %v677_v48  ;;  %v1597_v47 = vld [vmem:[%s2382_s17 + $0x2] sm:$0x1] }
  0x87   : >> { %v1778_v50 = vpop.eup %1777 }
  0x88   : >> { %v697_v51 = vmul.f32 0.5, %v1778_v50 }
  0x8a   : >> { %v698_v53 = vadd.f32 0.5, %v697_v51 }
  0x8c   : >> { %v699_v54 = vperm.slane %v698_v53, 0  ;;  %v702_v55 = vmul.f32 %v698_v53, %v2341_v6  ;;  %v777_v53 = vld [vmem:[%s775_s25 + $0x8] sm:$0xff] }
  0x8e   : >> { %v703_v57 = vadd.f32 %v702_v55, %v679_v52  ;;  %v2426_v58 = vsel %vm2394_vm0, %v699_v54, %v2107_v9  ;;  %v2431_v59 = vsel %vm2399_vm1, %v699_v54, %v2103_v10  ;;  %v707_v44 = vsel %vm704_vm4, %v699_v54, 0.0  ;;  %v776_v52 = vld [vmem:[%s775_s25] sm:$0xff] }
  0x8f   : >> { %v725_v4 = vmul.f32 %v720_v60, %v2426_v58  ;;  %v726_v11 = vmul.f32 %v721_v61, %v2431_v59  ;;  %v778_v55 = vstv %s2957_s27  ;;  %v1599_v10 = vld [vmem:[%s2406_s19 + $0x2] sm:$0x1]  ;;  %s823_s27 = sadd.s32 4, %s2377_s11  ;;  %vm984_vm1 = vcmp.eq.s32.totalorder %v2346_v7, 5 }
  0x90   : >> { %v738_v62 = vadd.f32 %v1591_v56, %v703_v57  ;;  %vm2485_vm6 = vcmp.eq.s32.totalorder %v2346_v7, %v778_v55  ;;  %vm2490_vm7 = vcmp.eq.s32.totalorder %v2351_v8, %v778_v55  ;;  %v805_v15 = vmul.f32 0.5, %v1599_v10  ;;  %s825_s9 = ssub.s32 0, %s823_s27  ;;  %p824_p12 = scmp.lt.s32.totalorder %s823_s27, 0 }
  0x91   : >> { %v727_v13 = vsel %vm2438_vm2, 0.0, %v725_v4  ;;  %v728_v14 = vsel %vm2443_vm3, 0.0, %v726_v11  ;;  %s1600_s28 = smin.u32 %s825_s9, %s823_s27 }
  0x92   : >> { %v739_v0 = vadd.f32 %v738_v62, %v2326_v2  ;;  %v729_v16 = vadd.f32 %v728_v14, %v727_v13  ;;  %s827_s29 = sand.u32 15, %s1600_s28  }
  0x93   : >> { %s828_s13 = ssub.s32 0, %s827_s29 }
  0x94   : >> { %v740_v12 = vmul.f32 0.5, %v739_v0  ;;  %v730_v20 = vrot.slane %v729_v16, 4  ;;  %s2961_s13 = smov (!%p824_p12, %s828_s13), %s827_s29 }
  0x95   : >> { %s1601_s10 = sshll.u32 %s2961_s13, 4 }
  0x96   : >> { %1779 = vtanh.f32 %v740_v12  ;;  %v731_v28 = vadd.f32 %v730_v20, %v729_v16  ;;  %s831_s25 = scalar_lea.vmem [#allocation8], %s1601_s10 }
  0x98   : >> { %v732_v35 = vrot.slane %v731_v28, 2 }
  0x9a   : >> { %v733_v38 = vadd.f32 %v732_v35, %v731_v28 }
  0x9c   : >> { %v1780_v17 = vpop.eup %1779  ;;  %v734_v39 = vrot.slane %v733_v38, 1 }
  0x9d   : >> { %v742_v18 = vmul.f32 0.5, %v1780_v17 }
  0x9e   : >> { %v735_v42 = vadd.f32 %v734_v39, %v733_v38  ;;  %v832_v38 = vld [vmem:[%s831_s25] sm:$0xff]  ;;  %v833_v39 = vld [vmem:[%s831_s25 + $0x8] sm:$0xff] }
  0x9f   : >> { %v743_v22 = vadd.f32 0.5, %v742_v18 }
  0xa1   : >> { %v744_v24 = vmul.f32 %v743_v22, %v2321_v1  ;;  %v745_v25 = vmul.f32 %v743_v22, %v2336_v5 }
  0xa3   : >> { %v746_v29 = vadd.f32 %v745_v25, %v2331_v3  ;;  %v761_v30 = vperm.slane %v744_v24, 0 }
  0xa5   : >> { %v750_v32 = vadd.f32 %v749_v26, %v746_v29  ;;  %v762_v33 = vsel %vm760_vm5, %v761_v30, %v706_v27  ;;  %v764_v34 = vperm.slane %v746_v29, 0 }
  0xa7   : >> { %v751_v36 = vmul.f32 0.5, %v750_v32  ;;  %v765_v37 = vsel %vm760_vm5, %v764_v34, %v709_v31 }
  0xa9   : >> { %1781 = vtanh.f32 %v751_v36 }
  0xaf   : >> { %v1782_v40 = vpop.eup %1781 }
  0xb0   : >> { %v753_v41 = vmul.f32 0.5, %v1782_v40 }
  0xb2   : >> { %v754_v43 = vadd.f32 0.5, %v753_v41  ;;  %v834_v41 = vstv %s2959_s12  ;;  %s879_s12 = sadd.s32 5, %s2377_s11 }
  0xb3   : >> { %vm2522_vm9 = vcmp.eq.s32.totalorder %v2346_v7, %v834_v41  ;;  %vm2527_vm10 = vcmp.eq.s32.totalorder %v2351_v8, %v834_v41  ;;  %s881_s27 = ssub.s32 0, %s879_s12  ;;  %p880_p13 = scmp.lt.s32.totalorder %s879_s12, 0 }
  0xb4   : >> { %v755_v45 = vperm.slane %v754_v43, 0  ;;  %v758_v46 = vmul.f32 %v754_v43, %v2341_v6  ;;  %s1606_s9 = smin.u32 %s881_s27, %s879_s12 }
  0xb5   : >> { %s883_s28 = sand.u32 15, %s1606_s9  }
  0xb6   : >> { %v759_v48 = vadd.f32 %v758_v46, %v735_v42  ;;  %v763_v49 = vsel %vm760_vm5, %v755_v45, %v707_v44  ;;  %v756_v50 = vsel %vm2438_vm2, %v755_v45, %v2426_v58  ;;  %v757_v51 = vsel %vm2443_vm3, %v755_v45, %v2431_v59  ;;  %s884_s29 = ssub.s32 0, %s883_s28 }
  0xb7   : >> { %v781_v57 = vmul.f32 %v776_v52, %v756_v50  ;;  %v782_v60 = vmul.f32 %v777_v53, %v757_v51  ;;  %s2963_s29 = smov (!%p880_p13, %s884_s29), %s883_s28 }
  0xb8   : >> { %v794_v54 = vadd.f32 %v1597_v47, %v759_v48  ;;  %s1607_s10 = sshll.u32 %s2963_s29, 4 }
  0xb9   : >> { %v783_v62 = vsel %vm2485_vm6, 0.0, %v781_v57  ;;  %v784_v63 = vsel %vm2490_vm7, 0.0, %v782_v60  ;;  %s887_s25 = scalar_lea.vmem [#allocation8], %s1607_s10 }
  0xba   : >> { %v795_v56 = vadd.f32 %v794_v54, %v2326_v2  ;;  %v785_v0 = vadd.f32 %v784_v63, %v783_v62  ;;  %v1605_v54 = vld [vmem:[%s2406_s19 + $0x3] sm:$0x1] }
  0xbb   : >> { %v861_v60 = vmul.f32 0.5, %v1605_v54 }
  0xbc   : >> { %v796_v59 = vmul.f32 0.5, %v795_v56  ;;  %v786_v9 = vrot.slane %v785_v0, 4 }
  0xbe   : >> { %1783 = vtanh.f32 %v796_v59  ;;  %v787_v16 = vadd.f32 %v786_v9, %v785_v0 }
  0xc0   : >> { %v788_v22 = vrot.slane %v787_v16, 2 }
  0xc2   : >> { %v789_v25 = vadd.f32 %v788_v22, %v787_v16 }
  0xc4   : >> { %v1784_v4 = vpop.eup %1783  ;;  %v790_v26 = vrot.slane %v789_v25, 1 }
  0xc5   : >> { %v798_v11 = vmul.f32 0.5, %v1784_v4 }
  0xc6   : >> { %v791_v29 = vadd.f32 %v790_v26, %v789_v25  ;;  %v889_v25 = vld [vmem:[%s887_s25 + $0x8] sm:$0xff] }
  0xc7   : >> { %v799_v12 = vadd.f32 0.5, %v798_v11 }
  0xc9   : >> { %v800_v13 = vmul.f32 %v799_v12, %v2321_v1  ;;  %v801_v14 = vmul.f32 %v799_v12, %v2336_v5 }
  0xcb   : >> { %v802_v17 = vadd.f32 %v801_v14, %v2331_v3  ;;  %v817_v18 = vperm.slane %v800_v13, 0 }
  0xcd   : >> { %v806_v19 = vadd.f32 %v805_v15, %v802_v17  ;;  %v818_v20 = vsel %vm816_vm8, %v817_v18, %v762_v33  ;;  %v820_v21 = vperm.slane %v802_v17, 0  ;;  %v1603_v33 = vld [vmem:[%s2382_s17 + $0x3] sm:$0x1] }
  0xcf   : >> { %v807_v23 = vmul.f32 0.5, %v806_v19  ;;  %v821_v24 = vsel %vm816_vm8, %v820_v21, %v765_v37  ;;  %v1609_v19 = vld [vmem:[%s2382_s17 + $0x4] sm:$0x1] }
  0xd1   : >> { %1785 = vtanh.f32 %v807_v23 }
  0xd7   : >> { %v1786_v27 = vpop.eup %1785 }
  0xd8   : >> { %v809_v28 = vmul.f32 0.5, %v1786_v27  ;;  %v890_v27 = vstv %s2961_s13  ;;  %s935_s13 = sadd.s32 6, %s2377_s11 }
  0xd9   : >> { %vm2559_vm12 = vcmp.eq.s32.totalorder %v2346_v7, %v890_v27  ;;  %vm2564_vm13 = vcmp.eq.s32.totalorder %v2351_v8, %v890_v27  ;;  %s937_s12 = ssub.s32 0, %s935_s13  ;;  %p936_p0 = scmp.lt.s32.totalorder %s935_s13, 0 }
  0xda   : >> { %v810_v30 = vadd.f32 0.5, %v809_v28  ;;  %s1612_s27 = smin.u32 %s937_s12, %s935_s13 }
  0xdb   : >> { %s939_s9 = sand.u32 15, %s1612_s27  }
  0xdc   : >> { %v811_v31 = vperm.slane %v810_v30, 0  ;;  %v814_v32 = vmul.f32 %v810_v30, %v2341_v6  ;;  %s940_s28 = ssub.s32 0, %s939_s9 }
  0xdd   : >> { %s2965_s28 = smov (!%p936_p0, %s940_s28), %s939_s9 }
  0xde   : >> { %v815_v34 = vadd.f32 %v814_v32, %v791_v29  ;;  %v819_v35 = vsel %vm816_vm8, %v811_v31, %v763_v49  ;;  %v812_v36 = vsel %vm2485_vm6, %v811_v31, %v756_v50  ;;  %v813_v37 = vsel %vm2490_vm7, %v811_v31, %v757_v51  ;;  %s1613_s10 = sshll.u32 %s2965_s28, 4 }
  0xdf   : >> { %v837_v43 = vmul.f32 %v832_v38, %v812_v36  ;;  %v838_v44 = vmul.f32 %v833_v39, %v813_v37  ;;  %vm1040_vm6 = vcmp.eq.s32.totalorder %v2346_v7, 6  ;;  %vm1096_vm7 = vcmp.eq.s32.totalorder %v2346_v7, 7 }
  0xe0   : >> { %v850_v40 = vadd.f32 %v1603_v33, %v815_v34 }
  0xe1   : >> { %v839_v48 = vsel %vm2522_vm9, 0.0, %v837_v43  ;;  %v840_v49 = vsel %vm2527_vm10, 0.0, %v838_v44 }
  0xe2   : >> { %v851_v42 = vadd.f32 %v850_v40, %v2326_v2  ;;  %v841_v50 = vadd.f32 %v840_v49, %v839_v48  ;;  %v1611_v40 = vld [vmem:[%s2406_s19 + $0x4] sm:$0x1] }
  0xe3   : >> { %v917_v44 = vmul.f32 0.5, %v1611_v40 }
  0xe4   : >> { %v852_v47 = vmul.f32 0.5, %v851_v42  ;;  %v842_v53 = vrot.slane %v841_v50, 4 }
  0xe6   : >> { %1787 = vtanh.f32 %v852_v47  ;;  %v843_v61 = vadd.f32 %v842_v53, %v841_v50 }
  0xe8   : >> { %v844_v4 = vrot.slane %v843_v61, 2 }
  0xea   : >> { %v845_v10 = vadd.f32 %v844_v4, %v843_v61 }
  0xec   : >> { %v1788_v51 = vpop.eup %1787  ;;  %v846_v12 = vrot.slane %v845_v10, 1 }
  0xed   : >> { %v854_v52 = vmul.f32 0.5, %v1788_v51 }
  0xee   : >> { %v847_v15 = vadd.f32 %v846_v12, %v845_v10 }
  0xef   : >> { %v855_v55 = vadd.f32 0.5, %v854_v52 }
  0xf1   : >> { %v856_v56 = vmul.f32 %v855_v55, %v2321_v1  ;;  %v857_v57 = vmul.f32 %v855_v55, %v2336_v5 }
  0xf3   : >> { %v858_v58 = vadd.f32 %v857_v57, %v2331_v3  ;;  %v873_v59 = vperm.slane %v856_v56, 0 }
  0xf5   : >> { %v862_v62 = vadd.f32 %v861_v60, %v858_v58  ;;  %v874_v63 = vsel %vm872_vm11, %v873_v59, %v818_v20  ;;  %v876_v0 = vperm.slane %v858_v58, 0 }
  0xf7   : >> { %v863_v11 = vmul.f32 0.5, %v862_v62  ;;  %v877_v9 = vsel %vm872_vm11, %v876_v0, %v821_v24  ;;  %v888_v24 = vld [vmem:[%s887_s25] sm:$0xff]  ;;  %s943_s25 = scalar_lea.vmem [#allocation8], %s1613_s10 }
  0xf8   : >> { %v1615_v62 = vld [vmem:[%s2382_s17 + $0x5] sm:$0x1]  ;;  %v945_v10 = vld [vmem:[%s943_s25 + $0x8] sm:$0xff] }
  0xf9   : >> { %1789 = vtanh.f32 %v863_v11 }
  0xff   : >> { %v1790_v13 = vpop.eup %1789 }
 0x100   : >> { %v865_v14 = vmul.f32 0.5, %v1790_v13  ;;  %v946_v13 = vstv %s2963_s29  ;;  %s991_s29 = sadd.s32 7, %s2377_s11 }
 0x101   : >> { %vm2598_vm15 = vcmp.eq.s32.totalorder %v2346_v7, %v946_v13  ;;  %vm2603_vm0 = vcmp.eq.s32.totalorder %v2351_v8, %v946_v13  ;;  %s993_s13 = ssub.s32 0, %s991_s29  ;;  %p992_p5 = scmp.lt.s32.totalorder %s991_s29, 0 }
 0x102   : >> { %v866_v16 = vadd.f32 0.5, %v865_v14  ;;  %s1618_s12 = smin.u32 %s993_s13, %s991_s29 }
 0x103   : >> { %s995_s27 = sand.u32 15, %s1618_s12  }
 0x104   : >> { %v867_v17 = vperm.slane %v866_v16, 0  ;;  %v870_v18 = vmul.f32 %v866_v16, %v2341_v6  ;;  %s996_s9 = ssub.s32 0, %s995_s27 }
 0x105   : >> { %s2967_s9 = smov (!%p992_p5, %s996_s9), %s995_s27 }
 0x106   : >> { %v871_v20 = vadd.f32 %v870_v18, %v847_v15  ;;  %v875_v21 = vsel %vm872_vm11, %v867_v17, %v819_v35  ;;  %v868_v22 = vsel %vm2522_vm9, %v867_v17, %v812_v36  ;;  %v869_v23 = vsel %vm2527_vm10, %v867_v17, %v813_v37  ;;  %s1619_s10 = sshll.u32 %s2967_s9, 4 }
 0x107   : >> { %v893_v29 = vmul.f32 %v888_v24, %v868_v22  ;;  %v894_v30 = vmul.f32 %v889_v25, %v869_v23 }
 0x108   : >> { %v906_v26 = vadd.f32 %v1609_v19, %v871_v20 }
 0x109   : >> { %v895_v34 = vsel %vm2559_vm12, 0.0, %v893_v29  ;;  %v896_v35 = vsel %vm2564_vm13, 0.0, %v894_v30 }
 0x10a   : >> { %v907_v28 = vadd.f32 %v906_v26, %v2326_v2  ;;  %v897_v36 = vadd.f32 %v896_v35, %v895_v34  ;;  %v1617_v26 = vld [vmem:[%s2406_s19 + $0x5] sm:$0x1] }
 0x10b   : >> { %v973_v30 = vmul.f32 0.5, %v1617_v26 }
 0x10c   : >> { %v908_v33 = vmul.f32 0.5, %v907_v28  ;;  %v898_v39 = vrot.slane %v897_v36, 4 }
 0x10e   : >> { %1791 = vtanh.f32 %v908_v33  ;;  %v899_v45 = vadd.f32 %v898_v39, %v897_v36 }
 0x110   : >> { %v900_v51 = vrot.slane %v899_v45, 2 }
 0x112   : >> { %v901_v54 = vadd.f32 %v900_v51, %v899_v45 }
 0x114   : >> { %v1792_v37 = vpop.eup %1791  ;;  %v902_v55 = vrot.slane %v901_v54, 1 }
 0x115   : >> { %v910_v38 = vmul.f32 0.5, %v1792_v37 }
 0x116   : >> { %v903_v60 = vadd.f32 %v902_v55, %v901_v54  ;;  %v1002_v55 = vstv %s2965_s28  ;;  %s1047_s28 = sadd.s32 8, %s2377_s11 }
 0x117   : >> { %v911_v41 = vadd.f32 0.5, %v910_v38  ;;  %vm2641_vm2 = vcmp.eq.s32.totalorder %v2346_v7, %v1002_v55  ;;  %vm2646_vm3 = vcmp.eq.s32.totalorder %v2351_v8, %v1002_v55  ;;  %s1049_s29 = ssub.s32 0, %s1047_s28  ;;  %p1048_p7 = scmp.lt.s32.totalorder %s1047_s28, 0 }
 0x118   : >> { %s1624_s13 = smin.u32 %s1049_s29, %s1047_s28  ;;  %s2930_s29 = sld [smem:[#allocation32_spill]] (%p640_p9) }
 0x119   : >> { %v912_v42 = vmul.f32 %v911_v41, %v2321_v1  ;;  %v913_v43 = vmul.f32 %v911_v41, %v2336_v5  ;;  %s1051_s12 = sand.u32 15, %s1624_s13  }
 0x11a   : >> { %s1052_s27 = ssub.s32 0, %s1051_s12 }
 0x11b   : >> { %v914_v46 = vadd.f32 %v913_v43, %v2331_v3  ;;  %v929_v47 = vperm.slane %v912_v42, 0  ;;  %s2969_s27 = smov (!%p1048_p7, %s1052_s27), %s1051_s12 }
 0x11c   : >> { %s1625_s11 = sshll.u32 %s2969_s27, 4  ;;  %s1159_s27 = sshll.u32 (%p640_p9), %s566_s30, 4  ;;  %s1160_s27 = int_to_ptr.vmem [resolvable:$true] %s1159_s27 }
 0x11d   : >> { %v918_v48 = vadd.f32 %v917_v44, %v914_v46  ;;  %v930_v49 = vsel %vm928_vm14, %v929_v47, %v874_v63  ;;  %v932_v50 = vperm.slane %v914_v46, 0 }
 0x11e   : > { %s1158_s12 = scalar_lea.hbm (%p640_p9), %s2930_s29, %s2344_s21 }
 0x11f   : >> { %v919_v52 = vmul.f32 0.5, %v918_v48  ;;  %v933_v53 = vsel %vm928_vm14, %v932_v50, %v877_v9  ;;  %v944_v9 = vld [vmem:[%s943_s25] sm:$0xff]  ;;  %s999_s25 = scalar_lea.vmem [#allocation8], %s1619_s10  ;;  %s1055_s10 = scalar_lea.vmem [#allocation8], %s1625_s11 }
 0x120   : >> { %v1621_v48 = vld [vmem:[%s2382_s17 + $0x6] sm:$0x1]  ;;  %s1161_s11 = sshll.u32 (%p640_p9), %s1158_s12, 4  ;;  %s1162_s11 = int_to_ptr.hbm [resolvable:$true] %s1161_s11 }
 0x121   : >> { %1793 = vtanh.f32 %v919_v52  ;;  %v1000_v52 = vld [vmem:[%s999_s25] sm:$0xff]  ;;  %s1911_s20 = sshra.s32 (%p640_p9), %s1162_s11, 4  ;;  %s1912_s20 = int_to_ptr.hbm [resolvable:$true] %s1911_s20 }
 0x122   : > { %s1913_s24 = scalar_lea.hbm (%p640_p9), %s1912_s20, 24  ;;  %p1918_p8 = scmp.lt.s32.totalorder (%p640_p9), %s1912_s20, %s2930_s29 }
 0x123   : > { %p1914_p2 = scmp.ne.s32.totalorder (%p640_p9), %s1912_s20, %s1913_s24 }
 0x125   : > { %p1915_p1 = pnand (%p640_p9), %p1914_p2, %p2254_p3 }
 0x127   : >> { %v1794_v56 = vpop.eup %1793  ;;  %p1916_p4 = pneg (%p640_p9), %p1915_p1 }
 0x128   : >> { %v921_v57 = vmul.f32 0.5, %v1794_v56 }
 0x12a   : >> { %v922_v61 = vadd.f32 0.5, %v921_v57 }
 0x12c   : >> { %v923_v58 = vperm.slane %v922_v61, 0  ;;  %v926_v59 = vmul.f32 %v922_v61, %v2341_v6 }
 0x12e   : >> { %v927_v63 = vadd.f32 %v926_v59, %v903_v60  ;;  %v2589_v0 = vsel %vm928_vm14, %v923_v58, %v875_v21  ;;  %v924_v4 = vsel %vm2559_vm12, %v923_v58, %v868_v22  ;;  %v925_v11 = vsel %vm2564_vm13, %v923_v58, %v869_v23 }
 0x12f   : >> { %v949_v15 = vmul.f32 %v944_v9, %v924_v4  ;;  %v950_v16 = vmul.f32 %v945_v10, %v925_v11 }
 0x130   : >> { %v962_v12 = vadd.f32 %v1615_v62, %v927_v63 }
 0x131   : >> { %v951_v20 = vsel %vm2598_vm15, 0.0, %v949_v15  ;;  %v952_v21 = vsel %vm2603_vm0, 0.0, %v950_v16 }
 0x132   : >> { %v963_v14 = vadd.f32 %v962_v12, %v2326_v2  ;;  %v953_v22 = vadd.f32 %v952_v21, %v951_v20  ;;  %v1623_v12 = vld [vmem:[%s2406_s19 + $0x6] sm:$0x1] }
 0x133   : >> { %v1029_v15 = vmul.f32 0.5, %v1623_v12 }
 0x134   : >> { %v964_v19 = vmul.f32 0.5, %v963_v14  ;;  %v954_v25 = vrot.slane %v953_v22, 4 }
 0x136   : >> { %1795 = vtanh.f32 %v964_v19  ;;  %v955_v31 = vadd.f32 %v954_v25, %v953_v22 }
 0x138   : >> { %v956_v37 = vrot.slane %v955_v31, 2 }
 0x13a   : >> { %v957_v40 = vadd.f32 %v956_v37, %v955_v31  ;;  %v1058_v37 = vstv %s2967_s9  ;;  %s1108_s9 = scalar_lea.vmem %s2868_s16, %s2373_s15 [#allocation13] }
 0x13b   : >> { %vm2667_vm4 = vcmp.eq.s32.totalorder %v2346_v7, %v1058_v37  ;;  %vm2672_vm5 = vcmp.eq.s32.totalorder %v2351_v8, %v1058_v37 }
 0x13c   : >> { %v1796_v23 = vpop.eup %1795  ;;  %v958_v41 = vrot.slane %v957_v40, 1 }
 0x13d   : >> { %v966_v24 = vmul.f32 0.5, %v1796_v23 }
 0x13e   : >> { %v959_v44 = vadd.f32 %v958_v41, %v957_v40 }
 0x13f   : >> { %v967_v27 = vadd.f32 0.5, %v966_v24 }
 0x141   : >> { %v968_v28 = vmul.f32 %v967_v27, %v2321_v1  ;;  %v969_v29 = vmul.f32 %v967_v27, %v2336_v5 }
 0x143   : >> { %v970_v32 = vadd.f32 %v969_v29, %v2331_v3  ;;  %v985_v33 = vperm.slane %v968_v28, 0  ;;  %v1627_v29 = vld [vmem:[%s2382_s17 + $0x7] sm:$0x1]  ;;  %s1102_s17 = scalar_lea.vmem %s559_s26, %s2373_s15 [#allocation9] }
 0x145   : >> { %v974_v34 = vadd.f32 %v973_v30, %v970_v32  ;;  %v2619_v35 = vsel %vm984_vm1, %v985_v33, %v930_v49  ;;  %v988_v36 = vperm.slane %v970_v32, 0  ;;  %v1056_v33 = vld [vmem:[%s1055_s10] sm:$0xff] }
 0x147   : >> { %v975_v38 = vmul.f32 0.5, %v974_v34  ;;  %v2623_v39 = vsel %vm984_vm1, %v988_v36, %v933_v53  ;;  %v1001_v53 = vld [vmem:[%s999_s25 + $0x8] sm:$0xff]  ;;  %s1104_s25 = scalar_lea.vmem %s566_s30, %s2373_s15 [#allocation10] }
 0x148   : >> { %v1057_v34 = vld [vmem:[%s1055_s10 + $0x8] sm:$0xff]  ;;  %s2932_s10 = sand.u32 (%p640_p9), 1, %s2210_s23  }
 0x149   : >> { %1797 = vtanh.f32 %v975_v38 }
 0x14f   : >> { %v1798_v42 = vpop.eup %1797 }
 0x150   : >> { %v977_v43 = vmul.f32 0.5, %v1798_v42 }
 0x152   : >> { %v978_v45 = vadd.f32 0.5, %v977_v43 }
 0x154   : >> { %v2628_v46 = vperm.slane %v978_v45, 0  ;;  %v982_v47 = vmul.f32 %v978_v45, %v2341_v6 }
 0x156   : >> { %v983_v49 = vadd.f32 %v982_v47, %v959_v44  ;;  %v980_v50 = vsel %vm2598_vm15, %v2628_v46, %v924_v4  ;;  %v981_v51 = vsel %vm2603_vm0, %v2628_v46, %v925_v11 }
 0x157   : >> { %v1005_v57 = vmul.f32 %v1000_v52, %v980_v50  ;;  %v1006_v60 = vmul.f32 %v1001_v53, %v981_v51 }
 0x158   : >> { %v1018_v54 = vadd.f32 %v1621_v48, %v983_v49 }
 0x159   : >> { %v1007_v62 = vsel %vm2641_vm2, 0.0, %v1005_v57  ;;  %v1008_v63 = vsel %vm2646_vm3, 0.0, %v1006_v60 }
 0x15a   : >> { %v1019_v56 = vadd.f32 %v1018_v54, %v2326_v2  ;;  %v1009_v4 = vadd.f32 %v1008_v63, %v1007_v62  ;;  %v1629_v54 = vld [vmem:[%s2406_s19 + $0x7] sm:$0x1]  ;;  %s1106_s19 = scalar_lea.vmem %s2869_s14, %s2373_s15 [#allocation12] }
 0x15b   : >> { %v1085_v61 = vmul.f32 0.5, %v1629_v54 }
 0x15c   : >> { %v1020_v59 = vmul.f32 0.5, %v1019_v56  ;;  %v1010_v10 = vrot.slane %v1009_v4, 4 }
 0x15e   : >> { %1799 = vtanh.f32 %v1020_v59  ;;  %v1011_v16 = vadd.f32 %v1010_v10, %v1009_v4 }
 0x160   : >> { %v1012_v19 = vrot.slane %v1011_v16, 2 }
 0x162   : >> { %v1013_v21 = vadd.f32 %v1012_v19, %v1011_v16  ;;  %v987_v16 = vsel %vm984_vm1, %v2628_v46, %v2589_v0 }
 0x164   : >> { %v1800_v11 = vpop.eup %1799  ;;  %v1014_v22 = vrot.slane %v1013_v21, 1 }
 0x165   : >> { %v1022_v9 = vmul.f32 0.5, %v1800_v11 }
 0x166   : >> { %v1015_v25 = vadd.f32 %v1014_v22, %v1013_v21 }
 0x167   : >> { %v1023_v13 = vadd.f32 0.5, %v1022_v9 }
 0x169   : >> { %v1025_v14 = vmul.f32 %v1023_v13, %v2336_v5  ;;  %v1024_v48 = vmul.f32 %v1023_v13, %v2321_v1 }
 0x16b   : >> { %v1026_v17 = vadd.f32 %v1025_v14, %v2331_v3  ;;  %v1041_v52 = vperm.slane %v1024_v48, 0 }
 0x16d   : >> { %v1030_v18 = vadd.f32 %v1029_v15, %v1026_v17  ;;  %v1044_v56 = vperm.slane %v1026_v17, 0  ;;  %v1042_v58 = vsel %vm1040_vm6, %v1041_v52, %v2619_v35 }
 0x16f   : >> { %v1031_v20 = vmul.f32 0.5, %v1030_v18  ;;  %v1045_v4 = vsel %vm1040_vm6, %v1044_v56, %v2623_v39 }
 0x171   : >> { %1801 = vtanh.f32 %v1031_v20 }
 0x177   : >> { %v1802_v23 = vpop.eup %1801 }
 0x178   : >> { %v1033_v24 = vmul.f32 0.5, %v1802_v23 }
 0x17a   : >> { %v1034_v26 = vadd.f32 0.5, %v1033_v24 }
 0x17c   : >> { %v1035_v27 = vperm.slane %v1034_v26, 0  ;;  %v1038_v28 = vmul.f32 %v1034_v26, %v2341_v6 }
 0x17e   : >> { %v1039_v30 = vadd.f32 %v1038_v28, %v1015_v25  ;;  %v1036_v31 = vsel %vm2641_vm2, %v1035_v27, %v980_v50  ;;  %v1037_v32 = vsel %vm2646_vm3, %v1035_v27, %v981_v51  ;;  %v1043_v20 = vsel %vm1040_vm6, %v1035_v27, %v987_v16 }
 0x17f   : >> { %v1061_v40 = vmul.f32 %v1056_v33, %v1036_v31  ;;  %v1062_v41 = vmul.f32 %v1057_v34, %v1037_v32 }
 0x180   : >> { %v1074_v36 = vadd.f32 %v1627_v29, %v1039_v30 }
 0x181   : >> { %v1063_v45 = vsel %vm2667_vm4, 0.0, %v1061_v40  ;;  %v1064_v47 = vsel %vm2672_vm5, 0.0, %v1062_v41 }
 0x182   : >> { %v1075_v38 = vadd.f32 %v1074_v36, %v2326_v2  ;;  %v1065_v49 = vadd.f32 %v1064_v47, %v1063_v45 }
 0x184   : >> { %v1076_v44 = vmul.f32 0.5, %v1075_v38  ;;  %v1066_v53 = vrot.slane %v1065_v49, 4 }
 0x186   : >> { %1803 = vtanh.f32 %v1076_v44  ;;  %v1067_v59 = vadd.f32 %v1066_v53, %v1065_v49 }
 0x188   : >> { %v1068_v35 = vrot.slane %v1067_v59, 2 }
 0x18a   : >> { %v1069_v39 = vadd.f32 %v1068_v35, %v1067_v59 }
 0x18c   : >> { %v1804_v50 = vpop.eup %1803  ;;  %v1070_v14 = vrot.slane %v1069_v39, 1 }
 0x18d   : >> { %v1078_v51 = vmul.f32 0.5, %v1804_v50 }
 0x18e   : >> { %v1071_v18 = vadd.f32 %v1070_v14, %v1069_v39 }
 0x18f   : >> { %v1079_v55 = vadd.f32 0.5, %v1078_v51 }
 0x191   : >> { %v1080_v57 = vmul.f32 %v1079_v55, %v2321_v1  ;;  %v1081_v60 = vmul.f32 %v1079_v55, %v2336_v5 }
 0x193   : >> { %v1082_v62 = vadd.f32 %v1081_v60, %v2331_v3  ;;  %v1097_v63 = vperm.slane %v1080_v57, 0 }
 0x195   : >> { %v1086_v11 = vadd.f32 %v1085_v61, %v1082_v62  ;;  %v1098_v9 = vsel %vm1096_vm7, %v1097_v63, %v1042_v58  ;;  %v1100_v10 = vperm.slane %v1082_v62, 0 }
 0x196   : >> { %1103 = vst [vmem:[%s1102_s17] sm:$0xff] %v1098_v9  ;;  %s2739_s17 = scalar_lea.sflag (%p640_p9), [#allocation11], %s2932_s10 }
 0x197   : >> { %v1087_v12 = vmul.f32 0.5, %v1086_v11  ;;  %v1101_v13 = vsel %vm1096_vm7, %v1100_v10, %v1045_v4 }
 0x198   : >> { %1107 = vst [vmem:[%s1106_s19] sm:$0xff] %v1101_v13 }
 0x199   : >> { %1805 = vtanh.f32 %v1087_v12  ;;  %1109 = vst [vmem:[%s1108_s9] sm:$0xff] %v1101_v13 }
 0x19f   : >> { %v1806_v15 = vpop.eup %1805 }
 0x1a0   : >> { %v1089_v17 = vmul.f32 0.5, %v1806_v15 }
 0x1a2   : >> { %v1090_v19 = vadd.f32 0.5, %v1089_v17 }
 0x1a4   : >> { %v1091_v21 = vperm.slane %v1090_v19, 0  ;;  %v1094_v22 = vmul.f32 %v1090_v19, %v2341_v6  ;;  %642 = sbr.rel (!%p640_p9) target bundleno = 101 (0x65), region = 219 }
 0x1a6   : >> { %v1092_v23 = vsel %vm2667_vm4, %v1091_v21, %v1036_v31   ;;  %v1093_v24 = vsel %vm2672_vm5, %v1091_v21, %v1037_v32   ;;  %v1095_v25 = vadd.f32 %v1094_v22, %v1071_v18   ;;  %v1099_v0 = vsel %vm1096_vm7, %v1091_v21, %v1043_v20 }
 0x1a7   : >> { %1105 = vst [vmem:[%s1104_s25] sm:$0xff] %v1099_v0  ;;  %v2928_v10 = vmov %v1093_v24  ;;  %v2929_v9 = vmov %v1092_v23  ;;  %s1917_s25 = scalar_lea.hbm (%p640_p9), %s2930_s29, 72 }
 0x1a8   : >> { %v2927_v21 = vmov %v1095_v25  ;;  %1110 = vst [vmem:[#allocation2] sm:$0xff] (%p640_p9), %v1092_v23  ;;  %p1919_p10 = scmp.lt.s32.totalorder (%p640_p9), %s1917_s25, %s1913_s24 }
 0x1a9   : > { %1111 = vst [vmem:[#allocation2 + $0x8] sm:$0xff] %v1093_v24 }
 0x1aa   : > { %p1920_p11 = por %p1919_p10, %p1918_p8 }
 0x1ac   : > { %p1921_p12 = pnand %p1920_p11, %p1916_p4 }
 0x1ae   : > { %1924 = shalt.err (!%p1921_p12)
}
 0x1af   : > { %s2117_s23 = smov 128   ;;  %s2118_s30 = smov 8  }
 0x1b0   : > { %1654 = dma.vmem_to_hbm [thread:$0]  (%p2254_p3), %s1160_s27, 384, %s1162_s11, %s2739_s17, %s2117_s23, %s2117_s23, %s2118_s30  }
 0x1b1   : > { %s2933_s20 = sld [smem:[#allocation31_spill]]  ;;  %s1141_s19 = sshll.u32 %s559_s26, 4  ;;  %s1142_s19 = int_to_ptr.vmem [resolvable:$true] %s1141_s19 }
 0x1b2   : > { %s1113_s15 = scalar_lea.sflag [#allocation5], %s2290_s6 }
 0x1b7   : > { %s2934_s9 = smov %s2933_s20  ;;  %s1140_s24 = scalar_lea.hbm %s2933_s20, %s2344_s21 }
 0x1b8   : > { %s1143_s25 = sshll.u32 %s1140_s24, 4  ;;  %s1945_s27 = scalar_lea.hbm %s2934_s9, 72  ;;  %s1144_s25 = int_to_ptr.hbm [resolvable:$true] %s1143_s25 }
 0x1b9   : > { %s1939_s28 = sshra.s32 %s1144_s25, 4  ;;  %s1940_s28 = int_to_ptr.hbm [resolvable:$true] %s1939_s28 }
 0x1ba   : > { %s1941_s16 = scalar_lea.hbm %s1940_s28, 24  ;;  %p1946_p7 = scmp.lt.s32.totalorder %s1940_s28, %s2934_s9 }
 0x1bb   : > { %p1942_p13 = scmp.ne.s32.totalorder %s1940_s28, %s1941_s16  ;;  %p1947_p9 = scmp.lt.s32.totalorder %s1945_s27, %s1941_s16 }
 0x1bd   : > { %p1943_p0 = pnand %p1942_p13, %p2254_p3  ;;  %p1948_p2 = por %p1947_p9, %p1946_p7 }
 0x1bf   : > { %p1944_p5 = pneg %p1943_p0 }
 0x1c1   : > { %p1949_p1 = pnand %p1948_p2, %p1944_p5 }
 0x1c3   : > { %1952 = shalt.err (!%p1949_p1)
}
 0x1c4   : > { %1653 = dma.vmem_to_hbm [thread:$0]  (%p2254_p3), %s1142_s19, 384, %s1144_s25, %s1113_s15, %s2117_s23, %s2117_s23, %s2118_s30  }
 0x1c5   : > { %s2935_s14 = sld [smem:[#allocation33_spill]]  ;;  %s2936_s20 = scalar_lea.vmem [#allocation12], %s2293_s8 }
 0x1c6   : > { %s1177_s24 = sshll.u32 %s2936_s20, 4  ;;  %s1178_s24 = int_to_ptr.vmem [resolvable:$true] %s1177_s24 }
 0x1cb   : > { %s1176_s10 = scalar_lea.hbm %s2935_s14, %s2344_s21  ;;  %s1973_s19 = scalar_lea.hbm %s2935_s14, 72 }
 0x1cc   : > { %s1179_s16 = sshll.u32 %s1176_s10, 4  ;;  %s1180_s16 = int_to_ptr.hbm [resolvable:$true] %s1179_s16 }
 0x1cd   : > { %s1967_s28 = sshra.s32 %s1180_s16, 4  ;;  %s1968_s28 = int_to_ptr.hbm [resolvable:$true] %s1967_s28 }
 0x1ce   : > { %s1969_s27 = scalar_lea.hbm %s1968_s28, 24  ;;  %p1974_p11 = scmp.lt.s32.totalorder %s1968_s28, %s2935_s14 }
 0x1cf   : > { %p1970_p4 = scmp.ne.s32.totalorder %s1968_s28, %s1969_s27  ;;  %p1975_p12 = scmp.lt.s32.totalorder %s1973_s19, %s1969_s27 }
 0x1d1   : > { %p1971_p8 = pnand %p1970_p4, %p2254_p3  ;;  %p1976_p13 = por %p1975_p12, %p1974_p11 }
 0x1d3   : > { %p1972_p10 = pneg %p1971_p8 }
 0x1d5   : > { %p1977_p0 = pnand %p1976_p13, %p1972_p10 }
 0x1d7   : > { %1980 = shalt.err (!%p1977_p0)
}
 0x1d8   : > { %1655 = dma.vmem_to_hbm [thread:$0]  (%p2254_p3), %s1178_s24, 384, %s1180_s16, %s2739_s17, %s2117_s23, %s2117_s23, %s2118_s30  }
 0x1d9   : > { %s2937_s10 = sld [smem:[#allocation34_spill]]  ;;  %s2938_s28 = scalar_lea.vmem [#allocation13], %s2293_s8 }
 0x1da   : > { %s1195_s27 = sshll.u32 %s2938_s28, 4  ;;  %s1128_s12 = scalar_lea.sflag [#allocation14], %s2290_s6  ;;  %s1196_s27 = int_to_ptr.vmem [resolvable:$true] %s1195_s27 }
 0x1df   : > { %s1194_s20 = scalar_lea.hbm %s2937_s10, %s2344_s21  ;;  %s2001_s17 = scalar_lea.hbm %s2937_s10, 72 }
 0x1e0   : > { %s1197_s11 = sshll.u32 %s1194_s20, 4  ;;  %s1198_s11 = int_to_ptr.hbm [resolvable:$true] %s1197_s11 }
 0x1e1   : > { %s1995_s19 = sshra.s32 %s1198_s11, 4  ;;  %s1996_s19 = int_to_ptr.hbm [resolvable:$true] %s1995_s19 }
 0x1e2   : > { %s1997_s25 = scalar_lea.hbm %s1996_s19, 24  ;;  %p2002_p2 = scmp.lt.s32.totalorder %s1996_s19, %s2937_s10 }
 0x1e3   : > { %p1998_p5 = scmp.ne.s32.totalorder %s1996_s19, %s1997_s25  ;;  %p2003_p1 = scmp.lt.s32.totalorder %s2001_s17, %s1997_s25 }
 0x1e5   : > { %p1999_p7 = pnand %p1998_p5, %p2254_p3  ;;  %p2004_p4 = por %p2003_p1, %p2002_p2 }
 0x1e7   : > { %p2000_p9 = pneg %p1999_p7 }
 0x1e9   : > { %p2005_p8 = pnand %p2004_p4, %p2000_p9 }
 0x1eb   : > { %2008 = shalt.err (!%p2005_p8)
}
 0x1ec   : > { %1656 = dma.vmem_to_hbm [thread:$0]  (%p2254_p3), %s1196_s27, 384, %s1198_s11, %s1128_s12, %s2117_s23, %s2117_s23, %s2118_s30  }
 0x1ed PF: > { %s2939_s6 = sld [smem:[#allocation21_spill]]  ;;  %p1688_p10 = scmp.ge.s32.totalorder %s2095_s22, 2 }
 0x1ef   : > { %p1673_p11 = pnand %p1688_p10, %p2226_p6 }
 0x1f1   : > { %p1674_p12 = pneg %p1673_p11 }
 0x1f3   : > { %s1212_s1 = sand.u32 1, %s2939_s6  }
 0x1f4   : > { %s1213_s21 = scalar_lea.sflag [#allocation5], %s1212_s1 }
 0x1f5   : > { %2062 = dma.done.wait (%p1674_p12), %s1213_s21, 384  }
 0x1f6   : > { %2064 = vsyncadd (%p1674_p12), %s1213_s21, 4294966912  ;;  %s2941_s26 = sadd.s32 4294967294, %s2095_s22  }
 0x1f7   : > { %s1222_s0 = sand.u32 1, %s2941_s26  }
 0x1f8   : > { %s1223_s13 = scalar_lea.sflag [#allocation11], %s1222_s0 }
 0x1f9   : > { %2066 = dma.done.wait (%p1674_p12), %s1223_s13, 768  }
 0x1fa   : > { %2068 = vsyncadd (%p1674_p12), %s1223_s13, 4294966528  ;;  %s1243_s20 = scalar_lea.sflag [#allocation14], %s1212_s1 }
 0x1fb   : > { %2070 = dma.done.wait (%p1674_p12), %s1243_s20, 384  }
 0x1fc   : > { %2072 = vsyncadd (%p1674_p12), %s1243_s20, 4294966912  ;;  %s37_s22 = sadd.s32 1, %s2095_s22   ;;  %s2942_s23 = sld [smem:[#allocation22_spill]] }
 0x1fd   : > { %p34_p3 = scmp.ge.s32.totalorder %s37_s22, 5   ;;  %s2943_s19 = sld [smem:[#allocation27_spill]] }
 0x1fe   : > { %s2944_s20 = sld [smem:[#allocation23_spill]]  ;;  %s2946_s17 = smov %s2079_s18 }
 0x1ff   : > { %s2945_s21 = sld [smem:[#allocation25_spill]]  ;;  %36 = sbr.rel (!%p34_p3) target bundleno = 20 (0x14), region = 230 }
 0x202   : > { %s2947_s18 = smov %s2942_s23 }
 0x204   :  { %1249 = vsyncpa [#allocation4], 1 }
 0x205   :  { %1251 = vsyncpa [#allocation4 + $0x1], 1 }
 0x206   :  { %1252 = vsyncpa [#allocation7], 1 }
 0x207   :  { %1254 = vsyncpa [#allocation7 + $0x1], 1 }
 0x208   :  { %1255 = vsyncpa [#allocation5], 1 }
 0x209   :  { %1257 = vsyncpa [#allocation5 + $0x1], 1 }
 0x20a   :  { %1258 = vsyncpa [#allocation11], 1 }
 0x20b   :  { %1260 = vsyncpa [#allocation11 + $0x1], 1 }
 0x20c   :  { %1261 = vsyncpa [#allocation14], 1 }
 0x20d   :  { %1263 = vsyncpa [#allocation14 + $0x1], 1 }

</bundles_post_ra>
